<compile_context>
chip_gen: v7x
topology: tpu7x:2x2x1
jax: 0.10.0
libtpu: 0.0.40
codegen_flags: <defaults>
</compile_context>

<pallas_src>
import functools

import jax
import jax.numpy as jnp
from jax.experimental import pallas as pl
from jax.experimental.pallas import tpu as pltpu

KW = 4                      # kernel_size
PADW = 2                    # int(np.ceil((4 - 1) / 2)) as in the module
BN_EPS = 1e-5
LRELU_SLOPE = 0.2

# Tile caps (bf16 operands): double-buffered blocks stay well under the
# scoped-VMEM limit on all of v5e / v6e / v7x.
TM_CAP = 512
TK_CAP = 1024
TN_CAP = 256
VMEM_LIMIT = 32 * 1024 * 1024


# ------------------------------ Pallas kernels ------------------------------ #
def _matmul_bias_act_kernel(p_ref, w_ref, b_ref, o_ref, acc_ref,
                            *, use_bias, use_lrelu):
    """Tiled matmul + (bias) + (LeakyReLU).  grid = (i over M, j over Cout, k over K)."""
    k = pl.program_id(2)

    @pl.when(k == 0)
    def _():
        acc_ref[...] = jnp.zeros_like(acc_ref)

    acc_ref[...] += jnp.dot(p_ref[...], w_ref[...],
                            preferred_element_type=jnp.float32)

    @pl.when(k == pl.num_programs(2) - 1)
    def _():
        y = acc_ref[...]
        if use_bias:
            y = y + b_ref[...]                       # (1, tn) broadcast
        if use_lrelu:
            y = jnp.where(y >= 0.0, y, LRELU_SLOPE * y)
        o_ref[...] = y.astype(o_ref.dtype)


def _matmul_stats_kernel(p_ref, w_ref, y_ref, sum_ref, sq_ref, acc_ref):
    """Tiled matmul that also accumulates per-channel sum / sum-of-squares.

    grid = (j over Cout tiles, i over M tiles, k over K tiles); the stats blocks
    keep the same block index across (i, k) so they stay VMEM-resident and are
    written back once per j tile.
    """
    i = pl.program_id(1)
    k = pl.program_id(2)

    @pl.when((i == 0) & (k == 0))
    def _():
        sum_ref[...] = jnp.zeros_like(sum_ref)
        sq_ref[...] = jnp.zeros_like(sq_ref)

    @pl.when(k == 0)
    def _():
        acc_ref[...] = jnp.zeros_like(acc_ref)

    acc_ref[...] += jnp.dot(p_ref[...], w_ref[...],
                            preferred_element_type=jnp.float32)

    @pl.when(k == pl.num_programs(2) - 1)
    def _():
        acc = acc_ref[...]
        y_ref[...] = acc.astype(y_ref.dtype)
        sum_ref[...] += jnp.sum(acc, axis=0, keepdims=True)
        sq_ref[...] += jnp.sum(acc * acc, axis=0, keepdims=True)


def _bn_lrelu_kernel(y_ref, sum_ref, sq_ref, o_ref, *, inv_m):
    """Second pass: normalize with global per-channel batch stats + LeakyReLU."""
    mean = sum_ref[...] * inv_m
    var = jnp.maximum(sq_ref[...] * inv_m - mean * mean, 0.0)
    rstd = jax.lax.rsqrt(var + BN_EPS)
    y = y_ref[...].astype(jnp.float32)
    z = (y - mean) * rstd
    o_ref[...] = jnp.where(z >= 0.0, z, LRELU_SLOPE * z).astype(o_ref.dtype)


# ----------------------------- Pallas wrappers ------------------------------ #
def _round_up(x, m):
    return (x + m - 1) // m * m


def _tiles(m, k, c):
    """Pick tile sizes (sublane mult of 16 for bf16, lane mult of 128) and padded dims."""
    tm = min(TM_CAP, _round_up(m, 16))
    tk = min(TK_CAP, _round_up(k, 128))
    tn = min(TN_CAP, _round_up(c, 128))
    return tm, tk, tn, _round_up(m, tm), _round_up(k, tk), _round_up(c, tn)


def _pad2d(x, rows, cols):
    r, c = x.shape
    return jnp.pad(x, ((0, rows - r), (0, cols - c)))


def _matmul_bias_act_layer(patches, w_mat, bias, *, tm, tn, tk,
                           use_bias, use_lrelu, out_dtype):
    mp, kp = patches.shape
    _, cp = w_mat.shape
    grid = (mp // tm, cp // tn, kp // tk)
    kernel = functools.partial(_matmul_bias_act_kernel,
                               use_bias=use_bias, use_lrelu=use_lrelu)
    return pl.pallas_call(
        kernel,
        out_shape=jax.ShapeDtypeStruct((mp, cp), out_dtype),
        grid=grid,
        in_specs=[
            pl.BlockSpec((tm, tk), lambda i, j, k: (i, k)),     # patches
            pl.BlockSpec((tk, tn), lambda i, j, k: (k, j)),     # weights
            pl.BlockSpec((1, tn), lambda i, j, k: (0, j)),      # bias
        ],
        out_specs=pl.BlockSpec((tm, tn), lambda i, j, k: (i, j)),
        scratch_shapes=[pltpu.VMEM((tm, tn), jnp.float32)],
        compiler_params=pltpu.CompilerParams(
            dimension_semantics=("parallel", "parallel", "arbitrary"),
            vmem_limit_bytes=VMEM_LIMIT),
    )(patches, w_mat, bias)


def _matmul_stats_layer(patches, w_mat, *, tm, tn, tk, y_dtype):
    mp, kp = patches.shape
    _, cp = w_mat.shape
    grid = (cp // tn, mp // tm, kp // tk)        # j outer, i middle, k inner
    return pl.pallas_call(
        _matmul_stats_kernel,
        out_shape=(jax.ShapeDtypeStruct((mp, cp), y_dtype),
                   jax.ShapeDtypeStruct((1, cp), jnp.float32),
                   jax.ShapeDtypeStruct((1, cp), jnp.float32)),
        grid=grid,
        in_specs=[
            pl.BlockSpec((tm, tk), lambda j, i, k: (i, k)),     # patches
            pl.BlockSpec((tk, tn), lambda j, i, k: (k, j)),     # weights
        ],
        out_specs=(
            pl.BlockSpec((tm, tn), lambda j, i, k: (i, j)),     # conv output
            pl.BlockSpec((1, tn), lambda j, i, k: (0, j)),      # per-channel sum
            pl.BlockSpec((1, tn), lambda j, i, k: (0, j)),      # per-channel sumsq
        ),
        scratch_shapes=[pltpu.VMEM((tm, tn), jnp.float32)],
        compiler_params=pltpu.CompilerParams(
            dimension_semantics=("parallel", "arbitrary", "arbitrary"),
            vmem_limit_bytes=VMEM_LIMIT),
    )(patches, w_mat)


def _bn_lrelu_layer(y, s1, s2, *, tm, tn, m_true, out_dtype):
    mp, cp = y.shape
    grid = (mp // tm, cp // tn)
    kernel = functools.partial(_bn_lrelu_kernel, inv_m=float(1.0 / m_true))
    return pl.pallas_call(
        kernel,
        out_shape=jax.ShapeDtypeStruct((mp, cp), out_dtype),
        grid=grid,
        in_specs=[
            pl.BlockSpec((tm, tn), lambda i, j: (i, j)),
            pl.BlockSpec((1, tn), lambda i, j: (0, j)),
            pl.BlockSpec((1, tn), lambda i, j: (0, j)),
        ],
        out_specs=pl.BlockSpec((tm, tn), lambda i, j: (i, j)),
        compiler_params=pltpu.CompilerParams(
            dimension_semantics=("parallel", "parallel"),
            vmem_limit_bytes=VMEM_LIMIT),
    )(y, s1, s2)


# -------------------------------- JAX glue ---------------------------------- #
def _im2col(x_nhwc, kw, stride, pad):
    """Extract kw x kw patches -> (N*OH*OW, kw*kw*C). stride/pad are static ints."""
    n, h, w, c = x_nhwc.shape
    xp = jnp.pad(x_nhwc, ((0, 0), (pad, pad), (pad, pad), (0, 0)))
    oh = (h + 2 * pad - kw) // stride + 1
    ow = (w + 2 * pad - kw) // stride + 1
    cols = []
    for kh in range(kw):
        for kwi in range(kw):
            cols.append(xp[:, kh:kh + stride * oh:stride,
                           kwi:kwi + stride * ow:stride, :])    # (N, OH, OW, C)
    patches = jnp.stack(cols, axis=3)                            # (N, OH, OW, kw*kw, C)
    return patches.reshape(n * oh * ow, kw * kw * c), oh, ow


def make_model(key, input_nc, ndf=64, n_layers=3):
    """Synthetic parameters (arrays) + STATIC per-layer config, mirroring __init__.
    norm_layer == BatchNorm2d  =>  use_bias=False on the inner convs."""
    spec = [(input_nc, ndf, 2, True, False, True)]   # (cin, cout, stride, bias, bn, lrelu)
    nf_mult = 1
    for n in range(1, n_layers):
        nf_prev, nf_mult = nf_mult, min(2 ** n, 8)
        spec.append((ndf * nf_prev, ndf * nf_mult, 2, False, True, True))
    nf_prev, nf_mult = nf_mult, min(2 ** n_layers, 8)
    spec.append((ndf * nf_prev, ndf * nf_mult, 1, False, True, True))
    spec.append((ndf * nf_mult, 1, 1, True, False, False))

    params, cfg = [], []
    for (cin, cout, stride, has_bias, has_bn, has_lrelu) in spec:
        key, k_w, k_b = jax.random.split(key, 3)
        w = 0.02 * jax.random.normal(k_w, (cout, cin, KW, KW), jnp.float32)   # OIHW
        b = (0.02 * jax.random.normal(k_b, (cout,), jnp.float32)
             if has_bias else jnp.zeros((cout,), jnp.float32))
        params.append(dict(w=w, b=b))
        cfg.append(dict(stride=stride, use_bias=has_bias,
                        use_bn=has_bn, use_lrelu=has_lrelu))
    return params, tuple(cfg)


def nlayer_discriminator_forward(x_nchw, params, *, cfg):
    """cfg is static (closed over), params are traced arrays only."""
    x = jnp.transpose(x_nchw, (0, 2, 3, 1)).astype(jnp.bfloat16)   # NCHW -> NHWC, bf16 acts
    n_layers_total = len(cfg)
    for li, (p, c) in enumerate(zip(params, cfg)):
        is_last = li == n_layers_total - 1
        n = x.shape[0]
        cout = p["w"].shape[0]

        patches, oh, ow = _im2col(x, KW, c["stride"], PADW)        # bf16 (M, K)
        m, k = patches.shape
        tm, tk, tn, mp, kp, cp = _tiles(m, k, cout)

        patches = _pad2d(patches, mp, kp)
        # OIHW -> (kh, kw, cin, cout) -> (kh*kw*cin, cout), matching patch ordering.
        w_mat = jnp.transpose(p["w"], (2, 3, 1, 0)).reshape(k, cout)
        w_mat = _pad2d(w_mat, kp, cp).astype(jnp.bfloat16)

        out_dtype = jnp.float32 if is_last else jnp.bfloat16
        if c["use_bn"]:
            # Pass 1: tiled matmul + global per-channel sum / sumsq (f32 accumulation).
            y, s1, s2 = _matmul_stats_layer(patches, w_mat,
                                            tm=tm, tn=tn, tk=tk,
                                            y_dtype=jnp.bfloat16)
            # Pass 2: normalize (true M, padded rows are zero) + LeakyReLU.
            out = _bn_lrelu_layer(y, s1, s2, tm=tm, tn=tn, m_true=m,
                                  out_dtype=out_dtype)
        else:
            bias = _pad2d(p["b"].reshape(1, cout).astype(jnp.float32), 1, cp)
            out = _matmul_bias_act_layer(patches, w_mat, bias,
                                         tm=tm, tn=tn, tk=tk,
                                         use_bias=c["use_bias"],
                                         use_lrelu=c["use_lrelu"],
                                         out_dtype=out_dtype)

        x = out[:m, :cout].reshape(n, oh, ow, cout)
    return jnp.transpose(x, (0, 3, 1, 2)).astype(jnp.float32)      # back to NCHW


# --------------------------- pure-JAX f32 reference -------------------------- #
def reference_forward(x_nchw, params, cfg):
    x = x_nchw
    for p, c in zip(params, cfg):
        y = jax.lax.conv_general_dilated(
            x, p["w"], window_strides=(c["stride"],) * 2,
            padding=[(PADW, PADW)] * 2,
            dimension_numbers=("NCHW", "OIHW", "NCHW"),
            precision=jax.lax.Precision.HIGHEST)
        if c["use_bias"]:
            y = y + p["b"][None, :, None, None]
        if c["use_bn"]:
            mean = jnp.mean(y, axis=(0, 2, 3), keepdims=True)
            var = jnp.mean(jnp.square(y - mean), axis=(0, 2, 3), keepdims=True)
            y = (y - mean) * jax.lax.rsqrt(var + BN_EPS)
        if c["use_lrelu"]:
            y = jnp.where(y >= 0.0, y, LRELU_SLOPE * y)
        x = y
    return x


# ----------------------------------- main ------------------------------------ #
if __name__ == "__main__":
    key = jax.random.PRNGKey(0)
    k_x, k_p = jax.random.split(key)

    N, input_nc, H, W = 2, 4, 16, 16
    ndf, n_layers = 8, 3                       # small but shape-consistent with the module

    x = jax.random.normal(k_x, (N, input_nc, H, W), jnp.float32)
    params, cfg = make_model(k_p, input_nc, ndf=ndf, n_layers=n_layers)

    fwd = jax.jit(functools.partial(nlayer_discriminator_forward, cfg=cfg))
    out = jax.block_until_ready(fwd(x, params))

    ref = jax.block_until_ready(reference_forward(x, params, cfg))
    assert out.shape == ref.shape == (N, 1, 5, 5), (out.shape, ref.shape)
    # Tolerance covers bf16 MXU operands (f32 accumulation) vs the HIGHEST-f32 reference.
    max_err = float(jnp.max(jnp.abs(out - ref)))
    assert jnp.allclose(out, ref, atol=5e-2, rtol=5e-2), max_err

    print("KERNEL_OK")
</pallas_src>

<mosaic_0001>
module attributes {stable_mosaic.version = 11 : i64} {
  func.func @_matmul_bias_act_kernel(%arg0: i32, %arg1: i32, %arg2: i32, %arg3: memref<176x128xbf16, #tpu.memory_space<vmem>>, %arg4: memref<128x128xbf16, #tpu.memory_space<vmem>>, %arg5: memref<1x128xf32, #tpu.memory_space<vmem>>, %arg6: memref<176x128xbf16, #tpu.memory_space<vmem>>, %arg7: memref<176x128xf32, #tpu.memory_space<vmem>>) attributes {dimension_semantics = [#tpu.dimension_semantics<parallel>, #tpu.dimension_semantics<parallel>, #tpu.dimension_semantics<arbitrary>], iteration_bounds = array<i64: 1, 1, 1>, scalar_prefetch = 0 : i64, scratch_operands = 1 : i64, tpu.core_type = #tpu.core_type<tc>, window_params = [{transform_indices = @transform_0, window_bounds = array<i64: 176, 128>}, {transform_indices = @transform_1, window_bounds = array<i64: 128, 128>}, {transform_indices = @transform_2, window_bounds = array<i64: 1, 128>}, {transform_indices = @transform_3, window_bounds = array<i64: 176, 128>}]} {
    %c0_i32 = arith.constant 0 : i32
    %0 = arith.cmpi eq, %arg2, %c0_i32 : i32
    %1 = arith.extui %0 : i1 to i32
    %c0_i32_0 = arith.constant 0 : i32
    %2 = arith.cmpi ne, %1, %c0_i32_0 : i32
    scf.if %2 {
      %cst_10 = arith.constant 0.000000e+00 : f32
      %12 = vector.broadcast %cst_10 : f32 to vector<176x128xf32>
      %c0_11 = arith.constant 0 : index
      %c0_12 = arith.constant 0 : index
      %13 = vector.load %arg7[%c0_11, %c0_12] : memref<176x128xf32, #tpu.memory_space<vmem>>, vector<176x128xf32>
      tpu.vector_store %arg7[%c0_11, %c0_12], %12 {strides = array<i32>} : memref<176x128xf32, #tpu.memory_space<vmem>>, vector<176x128xf32>,
    } else {
    }
    %c0 = arith.constant 0 : index
    %c0_1 = arith.constant 0 : index
    %3 = vector.load %arg7[%c0, %c0_1] : memref<176x128xf32, #tpu.memory_space<vmem>>, vector<176x128xf32>
    %c0_2 = arith.constant 0 : index
    %c0_3 = arith.constant 0 : index
    %4 = vector.load %arg3[%c0_2, %c0_3] : memref<176x128xbf16, #tpu.memory_space<vmem>>, vector<176x128xbf16>
    %c0_4 = arith.constant 0 : index
    %c0_5 = arith.constant 0 : index
    %5 = vector.load %arg4[%c0_4, %c0_5] : memref<128x128xbf16, #tpu.memory_space<vmem>>, vector<128x128xbf16>
    %cst = arith.constant dense<0.000000e+00> : vector<176x128xf32>
    %6 = tpu.matmul %4, %5, %cst {dimension_numbers = #tpu.dot_dimension_numbers<[1], [0], [0], [1], [0, 0, 1, 1], [], []>} : vector<176x128xbf16>, vector<128x128xbf16>, vector<176x128xf32> -> vector<176x128xf32>
    %7 = arith.addf %3, %6 : vector<176x128xf32>
    %c0_6 = arith.constant 0 : index
    %c0_7 = arith.constant 0 : index
    %8 = vector.load %arg7[%c0_6, %c0_7] : memref<176x128xf32, #tpu.memory_space<vmem>>, vector<176x128xf32>
    tpu.vector_store %arg7[%c0_6, %c0_7], %7 {strides = array<i32>} : memref<176x128xf32, #tpu.memory_space<vmem>>, vector<176x128xf32>,
    %c0_i32_8 = arith.constant 0 : i32
    %9 = arith.cmpi eq, %arg2, %c0_i32_8 : i32
    %10 = arith.extui %9 : i1 to i32
    %c0_i32_9 = arith.constant 0 : i32
    %11 = arith.cmpi ne, %10, %c0_i32_9 : i32
    scf.if %11 {
      %c0_10 = arith.constant 0 : index
      %c0_11 = arith.constant 0 : index
      %12 = vector.load %arg7[%c0_10, %c0_11] : memref<176x128xf32, #tpu.memory_space<vmem>>, vector<176x128xf32>
      %c0_12 = arith.constant 0 : index
      %c0_13 = arith.constant 0 : index
      %13 = vector.load %arg5[%c0_12, %c0_13] : memref<1x128xf32, #tpu.memory_space<vmem>>, vector<1x128xf32>
      %14 = vector.broadcast %13 : vector<1x128xf32> to vector<176x128xf32>
      %15 = arith.addf %12, %14 : vector<176x128xf32>
      %cst_14 = arith.constant 0.000000e+00 : f32
      %16 = vector.broadcast %cst_14 : f32 to vector<176x128xf32>
      %17 = arith.cmpf oge, %15, %16 : vector<176x128xf32>
      %cst_15 = arith.constant 2.000000e-01 : f32
      %18 = vector.broadcast %cst_15 : f32 to vector<176x128xf32>
      %19 = arith.mulf %18, %15 : vector<176x128xf32>
      %20 = arith.select %17, %15, %19 : vector<176x128xi1>, vector<176x128xf32>
      %21 = arith.truncf %20 : vector<176x128xf32> to vector<176x128xbf16>
      %c0_16 = arith.constant 0 : index
      %c0_17 = arith.constant 0 : index
      %22 = vector.load %arg6[%c0_16, %c0_17] : memref<176x128xbf16, #tpu.memory_space<vmem>>, vector<176x128xbf16>
      tpu.vector_store %arg6[%c0_16, %c0_17], %21 {strides = array<i32>} : memref<176x128xbf16, #tpu.memory_space<vmem>>, vector<176x128xbf16>,
    } else {
    }
    return
  }
  func.func @transform_0(%arg0: i32, %arg1: i32, %arg2: i32) -> (i32, i32) {
    %c0_i32 = arith.constant 0 : i32
    return %arg0, %arg2 : i32, i32
  }
  func.func @transform_1(%arg0: i32, %arg1: i32, %arg2: i32) -> (i32, i32) {
    %c0_i32 = arith.constant 0 : i32
    return %arg2, %arg1 : i32, i32
  }
  func.func @transform_2(%arg0: i32, %arg1: i32, %arg2: i32) -> (i32, i32) {
    %c0_i32 = arith.constant 0 : i32
    %c0_i32_0 = arith.constant 0 : i32
    return %c0_i32, %arg1 : i32, i32
  }
  func.func @transform_3(%arg0: i32, %arg1: i32, %arg2: i32) -> (i32, i32) {
    %c0_i32 = arith.constant 0 : i32
    return %arg0, %arg1 : i32, i32
  }
}

module attributes {stable_mosaic.version = 11 : i64} {
  func.func @_bn_lrelu_kernel(%arg0: i32, %arg1: i32, %arg2: memref<64x128xbf16, #tpu.memory_space<vmem>>, %arg3: memref<1x128xf32, #tpu.memory_space<vmem>>, %arg4: memref<1x128xf32, #tpu.memory_space<vmem>>, %arg5: memref<64x128xbf16, #tpu.memory_space<vmem>>) attributes {dimension_semantics = [#tpu.dimension_semantics<parallel>, #tpu.dimension_semantics<parallel>], iteration_bounds = array<i64: 1, 1>, scalar_prefetch = 0 : i64, scratch_operands = 0 : i64, tpu.core_type = #tpu.core_type<tc>, window_params = [{transform_indices = @transform_0, window_bounds = array<i64: 64, 128>}, {transform_indices = @transform_1, window_bounds = array<i64: 1, 128>}, {transform_indices = @transform_2, window_bounds = array<i64: 1, 128>}, {transform_indices = @transform_3, window_bounds = array<i64: 64, 128>}]} {
    %c0 = arith.constant 0 : index
    %c0_0 = arith.constant 0 : index
    %0 = vector.load %arg3[%c0, %c0_0] : memref<1x128xf32, #tpu.memory_space<vmem>>, vector<1x128xf32>
    %cst = arith.constant 2.000000e-02 : f32
    %1 = vector.broadcast %cst : f32 to vector<1x128xf32>
    %2 = arith.mulf %0, %1 : vector<1x128xf32>
    %c0_1 = arith.constant 0 : index
    %c0_2 = arith.constant 0 : index
    %3 = vector.load %arg4[%c0_1, %c0_2] : memref<1x128xf32, #tpu.memory_space<vmem>>, vector<1x128xf32>
    %cst_3 = arith.constant 2.000000e-02 : f32
    %4 = vector.broadcast %cst_3 : f32 to vector<1x128xf32>
    %5 = arith.mulf %3, %4 : vector<1x128xf32>
    %6 = arith.mulf %2, %2 : vector<1x128xf32>
    %7 = arith.subf %5, %6 : vector<1x128xf32>
    %cst_4 = arith.constant 0.000000e+00 : f32
    %8 = vector.broadcast %cst_4 : f32 to vector<1x128xf32>
    %9 = arith.maximumf %7, %8 : vector<1x128xf32>
    %cst_5 = arith.constant 9.99999974E-6 : f32
    %10 = vector.broadcast %cst_5 : f32 to vector<1x128xf32>
    %11 = arith.addf %9, %10 : vector<1x128xf32>
    %12 = math.rsqrt %11 : vector<1x128xf32>
    %c0_6 = arith.constant 0 : index
    %c0_7 = arith.constant 0 : index
    %13 = vector.load %arg2[%c0_6, %c0_7] : memref<64x128xbf16, #tpu.memory_space<vmem>>, vector<64x128xbf16>
    %14 = arith.extf %13 : vector<64x128xbf16> to vector<64x128xf32>
    %15 = vector.broadcast %2 : vector<1x128xf32> to vector<64x128xf32>
    %16 = arith.subf %14, %15 : vector<64x128xf32>
    %17 = vector.broadcast %12 : vector<1x128xf32> to vector<64x128xf32>
    %18 = arith.mulf %16, %17 : vector<64x128xf32>
    %cst_8 = arith.constant 0.000000e+00 : f32
    %19 = vector.broadcast %cst_8 : f32 to vector<64x128xf32>
    %20 = arith.cmpf oge, %18, %19 : vector<64x128xf32>
    %cst_9 = arith.constant 2.000000e-01 : f32
    %21 = vector.broadcast %cst_9 : f32 to vector<64x128xf32>
    %22 = arith.mulf %21, %18 : vector<64x128xf32>
    %23 = arith.select %20, %18, %22 : vector<64x128xi1>, vector<64x128xf32>
    %24 = arith.truncf %23 : vector<64x128xf32> to vector<64x128xbf16>
    %c0_10 = arith.constant 0 : index
    %c0_11 = arith.constant 0 : index
    %25 = vector.load %arg5[%c0_10, %c0_11] : memref<64x128xbf16, #tpu.memory_space<vmem>>, vector<64x128xbf16>
    tpu.vector_store %arg5[%c0_10, %c0_11], %24 {strides = array<i32>} : memref<64x128xbf16, #tpu.memory_space<vmem>>, vector<64x128xbf16>,
    return
  }
  func.func @transform_0(%arg0: i32, %arg1: i32) -> (i32, i32) {
    %c0_i32 = arith.constant 0 : i32
    return %arg0, %arg1 : i32, i32
  }
  func.func @transform_1(%arg0: i32, %arg1: i32) -> (i32, i32) {
    %c0_i32 = arith.constant 0 : i32
    %c0_i32_0 = arith.constant 0 : i32
    return %c0_i32, %arg1 : i32, i32
  }
  func.func @transform_2(%arg0: i32, %arg1: i32) -> (i32, i32) {
    %c0_i32 = arith.constant 0 : i32
    %c0_i32_0 = arith.constant 0 : i32
    return %c0_i32, %arg1 : i32, i32
  }
  func.func @transform_3(%arg0: i32, %arg1: i32) -> (i32, i32) {
    %c0_i32 = arith.constant 0 : i32
    return %arg0, %arg1 : i32, i32
  }
}

module attributes {stable_mosaic.version = 11 : i64} {
  func.func @_matmul_stats_kernel(%arg0: i32, %arg1: i32, %arg2: i32, %arg3: memref<64x128xbf16, #tpu.memory_space<vmem>>, %arg4: memref<128x128xbf16, #tpu.memory_space<vmem>>, %arg5: memref<64x128xbf16, #tpu.memory_space<vmem>>, %arg6: memref<1x128xf32, #tpu.memory_space<vmem>>, %arg7: memref<1x128xf32, #tpu.memory_space<vmem>>, %arg8: memref<64x128xf32, #tpu.memory_space<vmem>>) attributes {dimension_semantics = [#tpu.dimension_semantics<parallel>, #tpu.dimension_semantics<arbitrary>, #tpu.dimension_semantics<arbitrary>], iteration_bounds = array<i64: 1, 1, 1>, scalar_prefetch = 0 : i64, scratch_operands = 1 : i64, tpu.core_type = #tpu.core_type<tc>, window_params = [{transform_indices = @transform_0, window_bounds = array<i64: 64, 128>}, {transform_indices = @transform_1, window_bounds = array<i64: 128, 128>}, {transform_indices = @transform_2, window_bounds = array<i64: 64, 128>}, {transform_indices = @transform_3, window_bounds = array<i64: 1, 128>}, {transform_indices = @transform_4, window_bounds = array<i64: 1, 128>}]} {
    %c0_i32 = arith.constant 0 : i32
    %0 = arith.cmpi eq, %arg1, %c0_i32 : i32
    %c0_i32_0 = arith.constant 0 : i32
    %1 = arith.cmpi eq, %arg2, %c0_i32_0 : i32
    %2 = arith.andi %0, %1 : i1
    %3 = arith.extui %2 : i1 to i32
    %c0_i32_1 = arith.constant 0 : i32
    %4 = arith.cmpi ne, %3, %c0_i32_1 : i32
    scf.if %4 {
      %cst_13 = arith.constant 0.000000e+00 : f32
      %17 = vector.broadcast %cst_13 : f32 to vector<1x128xf32>
      %c0_14 = arith.constant 0 : index
      %c0_15 = arith.constant 0 : index
      %18 = vector.load %arg6[%c0_14, %c0_15] : memref<1x128xf32, #tpu.memory_space<vmem>>, vector<1x128xf32>
      tpu.vector_store %arg6[%c0_14, %c0_15], %17 {strides = array<i32>} : memref<1x128xf32, #tpu.memory_space<vmem>>, vector<1x128xf32>,
      %cst_16 = arith.constant 0.000000e+00 : f32
      %19 = vector.broadcast %cst_16 : f32 to vector<1x128xf32>
      %c0_17 = arith.constant 0 : index
      %c0_18 = arith.constant 0 : index
      %20 = vector.load %arg7[%c0_17, %c0_18] : memref<1x128xf32, #tpu.memory_space<vmem>>, vector<1x128xf32>
      tpu.vector_store %arg7[%c0_17, %c0_18], %19 {strides = array<i32>} : memref<1x128xf32, #tpu.memory_space<vmem>>, vector<1x128xf32>,
    } else {
    }
    %c0_i32_2 = arith.constant 0 : i32
    %5 = arith.cmpi eq, %arg2, %c0_i32_2 : i32
    %6 = arith.extui %5 : i1 to i32
    %c0_i32_3 = arith.constant 0 : i32
    %7 = arith.cmpi ne, %6, %c0_i32_3 : i32
    scf.if %7 {
      %cst_13 = arith.constant 0.000000e+00 : f32
      %17 = vector.broadcast %cst_13 : f32 to vector<64x128xf32>
      %c0_14 = arith.constant 0 : index
      %c0_15 = arith.constant 0 : index
      %18 = vector.load %arg8[%c0_14, %c0_15] : memref<64x128xf32, #tpu.memory_space<vmem>>, vector<64x128xf32>
      tpu.vector_store %arg8[%c0_14, %c0_15], %17 {strides = array<i32>} : memref<64x128xf32, #tpu.memory_space<vmem>>, vector<64x128xf32>,
    } else {
    }
    %c0 = arith.constant 0 : index
    %c0_4 = arith.constant 0 : index
    %8 = vector.load %arg8[%c0, %c0_4] : memref<64x128xf32, #tpu.memory_space<vmem>>, vector<64x128xf32>
    %c0_5 = arith.constant 0 : index
    %c0_6 = arith.constant 0 : index
    %9 = vector.load %arg3[%c0_5, %c0_6] : memref<64x128xbf16, #tpu.memory_space<vmem>>, vector<64x128xbf16>
    %c0_7 = arith.constant 0 : index
    %c0_8 = arith.constant 0 : index
    %10 = vector.load %arg4[%c0_7, %c0_8] : memref<128x128xbf16, #tpu.memory_space<vmem>>, vector<128x128xbf16>
    %cst = arith.constant dense<0.000000e+00> : vector<64x128xf32>
    %11 = tpu.matmul %9, %10, %cst {dimension_numbers = #tpu.dot_dimension_numbers<[1], [0], [0], [1], [0, 0, 1, 1], [], []>} : vector<64x128xbf16>, vector<128x128xbf16>, vector<64x128xf32> -> vector<64x128xf32>
    %12 = arith.addf %8, %11 : vector<64x128xf32>
    %c0_9 = arith.constant 0 : index
    %c0_10 = arith.constant 0 : index
    %13 = vector.load %arg8[%c0_9, %c0_10] : memref<64x128xf32, #tpu.memory_space<vmem>>, vector<64x128xf32>
    tpu.vector_store %arg8[%c0_9, %c0_10], %12 {strides = array<i32>} : memref<64x128xf32, #tpu.memory_space<vmem>>, vector<64x128xf32>,
    %c0_i32_11 = arith.constant 0 : i32
    %14 = arith.cmpi eq, %arg2, %c0_i32_11 : i32
    %15 = arith.extui %14 : i1 to i32
    %c0_i32_12 = arith.constant 0 : i32
    %16 = arith.cmpi ne, %15, %c0_i32_12 : i32
    scf.if %16 {
      %c0_13 = arith.constant 0 : index
      %c0_14 = arith.constant 0 : index
      %17 = vector.load %arg8[%c0_13, %c0_14] : memref<64x128xf32, #tpu.memory_space<vmem>>, vector<64x128xf32>
      %18 = arith.truncf %17 : vector<64x128xf32> to vector<64x128xbf16>
      %c0_15 = arith.constant 0 : index
      %c0_16 = arith.constant 0 : index
      %19 = vector.load %arg5[%c0_15, %c0_16] : memref<64x128xbf16, #tpu.memory_space<vmem>>, vector<64x128xbf16>
      tpu.vector_store %arg5[%c0_15, %c0_16], %18 {strides = array<i32>} : memref<64x128xbf16, #tpu.memory_space<vmem>>, vector<64x128xbf16>,
      %c0_17 = arith.constant 0 : index
      %c0_18 = arith.constant 0 : index
      %20 = vector.load %arg6[%c0_17, %c0_18] : memref<1x128xf32, #tpu.memory_space<vmem>>, vector<1x128xf32>
      %cst_19 = arith.constant dense<0.000000e+00> : vector<128xf32>
      %21 = vector.multi_reduction <add>, %17, %cst_19 [0] : vector<64x128xf32> to vector<128xf32>
      %22 = vector.shape_cast %21 : vector<128xf32> to vector<1x128xf32>
      %23 = arith.addf %20, %22 : vector<1x128xf32>
      %c0_20 = arith.constant 0 : index
      %c0_21 = arith.constant 0 : index
      %24 = vector.load %arg6[%c0_20, %c0_21] : memref<1x128xf32, #tpu.memory_space<vmem>>, vector<1x128xf32>
      tpu.vector_store %arg6[%c0_20, %c0_21], %23 {strides = array<i32>} : memref<1x128xf32, #tpu.memory_space<vmem>>, vector<1x128xf32>,
      %c0_22 = arith.constant 0 : index
      %c0_23 = arith.constant 0 : index
      %25 = vector.load %arg7[%c0_22, %c0_23] : memref<1x128xf32, #tpu.memory_space<vmem>>, vector<1x128xf32>
      %26 = arith.mulf %17, %17 : vector<64x128xf32>
      %cst_24 = arith.constant dense<0.000000e+00> : vector<128xf32>
      %27 = vector.multi_reduction <add>, %26, %cst_24 [0] : vector<64x128xf32> to vector<128xf32>
      %28 = vector.shape_cast %27 : vector<128xf32> to vector<1x128xf32>
      %29 = arith.addf %25, %28 : vector<1x128xf32>
      %c0_25 = arith.constant 0 : index
      %c0_26 = arith.constant 0 : index
      %30 = vector.load %arg7[%c0_25, %c0_26] : memref<1x128xf32, #tpu.memory_space<vmem>>, vector<1x128xf32>
      tpu.vector_store %arg7[%c0_25, %c0_26], %29 {strides = array<i32>} : memref<1x128xf32, #tpu.memory_space<vmem>>, vector<1x128xf32>,
    } else {
    }
    return
  }
  func.func @transform_0(%arg0: i32, %arg1: i32, %arg2: i32) -> (i32, i32) {
    %c0_i32 = arith.constant 0 : i32
    return %arg1, %arg2 : i32, i32
  }
  func.func @transform_1(%arg0: i32, %arg1: i32, %arg2: i32) -> (i32, i32) {
    %c0_i32 = arith.constant 0 : i32
    return %arg2, %arg0 : i32, i32
  }
  func.func @transform_2(%arg0: i32, %arg1: i32, %arg2: i32) -> (i32, i32) {
    %c0_i32 = arith.constant 0 : i32
    return %arg1, %arg0 : i32, i32
  }
  func.func @transform_3(%arg0: i32, %arg1: i32, %arg2: i32) -> (i32, i32) {
    %c0_i32 = arith.constant 0 : i32
    %c0_i32_0 = arith.constant 0 : i32
    return %c0_i32, %arg0 : i32, i32
  }
  func.func @transform_4(%arg0: i32, %arg1: i32, %arg2: i32) -> (i32, i32) {
    %c0_i32 = arith.constant 0 : i32
    %c0_i32_0 = arith.constant 0 : i32
    return %c0_i32, %arg0 : i32, i32
  }
}

module attributes {stable_mosaic.version = 11 : i64} {
  func.func @_bn_lrelu_kernel(%arg0: i32, %arg1: i32, %arg2: memref<32x128xbf16, #tpu.memory_space<vmem>>, %arg3: memref<1x128xf32, #tpu.memory_space<vmem>>, %arg4: memref<1x128xf32, #tpu.memory_space<vmem>>, %arg5: memref<32x128xbf16, #tpu.memory_space<vmem>>) attributes {dimension_semantics = [#tpu.dimension_semantics<parallel>, #tpu.dimension_semantics<parallel>], iteration_bounds = array<i64: 1, 1>, scalar_prefetch = 0 : i64, scratch_operands = 0 : i64, tpu.core_type = #tpu.core_type<tc>, window_params = [{transform_indices = @transform_0, window_bounds = array<i64: 32, 128>}, {transform_indices = @transform_1, window_bounds = array<i64: 1, 128>}, {transform_indices = @transform_2, window_bounds = array<i64: 1, 128>}, {transform_indices = @transform_3, window_bounds = array<i64: 32, 128>}]} {
    %c0 = arith.constant 0 : index
    %c0_0 = arith.constant 0 : index
    %0 = vector.load %arg3[%c0, %c0_0] : memref<1x128xf32, #tpu.memory_space<vmem>>, vector<1x128xf32>
    %cst = arith.constant 0.055555556 : f32
    %1 = vector.broadcast %cst : f32 to vector<1x128xf32>
    %2 = arith.mulf %0, %1 : vector<1x128xf32>
    %c0_1 = arith.constant 0 : index
    %c0_2 = arith.constant 0 : index
    %3 = vector.load %arg4[%c0_1, %c0_2] : memref<1x128xf32, #tpu.memory_space<vmem>>, vector<1x128xf32>
    %cst_3 = arith.constant 0.055555556 : f32
    %4 = vector.broadcast %cst_3 : f32 to vector<1x128xf32>
    %5 = arith.mulf %3, %4 : vector<1x128xf32>
    %6 = arith.mulf %2, %2 : vector<1x128xf32>
    %7 = arith.subf %5, %6 : vector<1x128xf32>
    %cst_4 = arith.constant 0.000000e+00 : f32
    %8 = vector.broadcast %cst_4 : f32 to vector<1x128xf32>
    %9 = arith.maximumf %7, %8 : vector<1x128xf32>
    %cst_5 = arith.constant 9.99999974E-6 : f32
    %10 = vector.broadcast %cst_5 : f32 to vector<1x128xf32>
    %11 = arith.addf %9, %10 : vector<1x128xf32>
    %12 = math.rsqrt %11 : vector<1x128xf32>
    %c0_6 = arith.constant 0 : index
    %c0_7 = arith.constant 0 : index
    %13 = vector.load %arg2[%c0_6, %c0_7] : memref<32x128xbf16, #tpu.memory_space<vmem>>, vector<32x128xbf16>
    %14 = arith.extf %13 : vector<32x128xbf16> to vector<32x128xf32>
    %15 = vector.broadcast %2 : vector<1x128xf32> to vector<32x128xf32>
    %16 = arith.subf %14, %15 : vector<32x128xf32>
    %17 = vector.broadcast %12 : vector<1x128xf32> to vector<32x128xf32>
    %18 = arith.mulf %16, %17 : vector<32x128xf32>
    %cst_8 = arith.constant 0.000000e+00 : f32
    %19 = vector.broadcast %cst_8 : f32 to vector<32x128xf32>
    %20 = arith.cmpf oge, %18, %19 : vector<32x128xf32>
    %cst_9 = arith.constant 2.000000e-01 : f32
    %21 = vector.broadcast %cst_9 : f32 to vector<32x128xf32>
    %22 = arith.mulf %21, %18 : vector<32x128xf32>
    %23 = arith.select %20, %18, %22 : vector<32x128xi1>, vector<32x128xf32>
    %24 = arith.truncf %23 : vector<32x128xf32> to vector<32x128xbf16>
    %c0_10 = arith.constant 0 : index
    %c0_11 = arith.constant 0 : index
    %25 = vector.load %arg5[%c0_10, %c0_11] : memref<32x128xbf16, #tpu.memory_space<vmem>>, vector<32x128xbf16>
    tpu.vector_store %arg5[%c0_10, %c0_11], %24 {strides = array<i32>} : memref<32x128xbf16, #tpu.memory_space<vmem>>, vector<32x128xbf16>,
    return
  }
  func.func @transform_0(%arg0: i32, %arg1: i32) -> (i32, i32) {
    %c0_i32 = arith.constant 0 : i32
    return %arg0, %arg1 : i32, i32
  }
  func.func @transform_1(%arg0: i32, %arg1: i32) -> (i32, i32) {
    %c0_i32 = arith.constant 0 : i32
    %c0_i32_0 = arith.constant 0 : i32
    return %c0_i32, %arg1 : i32, i32
  }
  func.func @transform_2(%arg0: i32, %arg1: i32) -> (i32, i32) {
    %c0_i32 = arith.constant 0 : i32
    %c0_i32_0 = arith.constant 0 : i32
    return %c0_i32, %arg1 : i32, i32
  }
  func.func @transform_3(%arg0: i32, %arg1: i32) -> (i32, i32) {
    %c0_i32 = arith.constant 0 : i32
    return %arg0, %arg1 : i32, i32
  }
}

module attributes {stable_mosaic.version = 11 : i64} {
  func.func @_matmul_stats_kernel(%arg0: i32, %arg1: i32, %arg2: i32, %arg3: memref<32x256xbf16, #tpu.memory_space<vmem>>, %arg4: memref<256x128xbf16, #tpu.memory_space<vmem>>, %arg5: memref<32x128xbf16, #tpu.memory_space<vmem>>, %arg6: memref<1x128xf32, #tpu.memory_space<vmem>>, %arg7: memref<1x128xf32, #tpu.memory_space<vmem>>, %arg8: memref<32x128xf32, #tpu.memory_space<vmem>>) attributes {dimension_semantics = [#tpu.dimension_semantics<parallel>, #tpu.dimension_semantics<arbitrary>, #tpu.dimension_semantics<arbitrary>], iteration_bounds = array<i64: 1, 1, 1>, scalar_prefetch = 0 : i64, scratch_operands = 1 : i64, tpu.core_type = #tpu.core_type<tc>, window_params = [{transform_indices = @transform_0, window_bounds = array<i64: 32, 256>}, {transform_indices = @transform_1, window_bounds = array<i64: 256, 128>}, {transform_indices = @transform_2, window_bounds = array<i64: 32, 128>}, {transform_indices = @transform_3, window_bounds = array<i64: 1, 128>}, {transform_indices = @transform_4, window_bounds = array<i64: 1, 128>}]} {
    %c0_i32 = arith.constant 0 : i32
    %0 = arith.cmpi eq, %arg1, %c0_i32 : i32
    %c0_i32_0 = arith.constant 0 : i32
    %1 = arith.cmpi eq, %arg2, %c0_i32_0 : i32
    %2 = arith.andi %0, %1 : i1
    %3 = arith.extui %2 : i1 to i32
    %c0_i32_1 = arith.constant 0 : i32
    %4 = arith.cmpi ne, %3, %c0_i32_1 : i32
    scf.if %4 {
      %cst_13 = arith.constant 0.000000e+00 : f32
      %17 = vector.broadcast %cst_13 : f32 to vector<1x128xf32>
      %c0_14 = arith.constant 0 : index
      %c0_15 = arith.constant 0 : index
      %18 = vector.load %arg6[%c0_14, %c0_15] : memref<1x128xf32, #tpu.memory_space<vmem>>, vector<1x128xf32>
      tpu.vector_store %arg6[%c0_14, %c0_15], %17 {strides = array<i32>} : memref<1x128xf32, #tpu.memory_space<vmem>>, vector<1x128xf32>,
      %cst_16 = arith.constant 0.000000e+00 : f32
      %19 = vector.broadcast %cst_16 : f32 to vector<1x128xf32>
      %c0_17 = arith.constant 0 : index
      %c0_18 = arith.constant 0 : index
      %20 = vector.load %arg7[%c0_17, %c0_18] : memref<1x128xf32, #tpu.memory_space<vmem>>, vector<1x128xf32>
      tpu.vector_store %arg7[%c0_17, %c0_18], %19 {strides = array<i32>} : memref<1x128xf32, #tpu.memory_space<vmem>>, vector<1x128xf32>,
    } else {
    }
    %c0_i32_2 = arith.constant 0 : i32
    %5 = arith.cmpi eq, %arg2, %c0_i32_2 : i32
    %6 = arith.extui %5 : i1 to i32
    %c0_i32_3 = arith.constant 0 : i32
    %7 = arith.cmpi ne, %6, %c0_i32_3 : i32
    scf.if %7 {
      %cst_13 = arith.constant 0.000000e+00 : f32
      %17 = vector.broadcast %cst_13 : f32 to vector<32x128xf32>
      %c0_14 = arith.constant 0 : index
      %c0_15 = arith.constant 0 : index
      %18 = vector.load %arg8[%c0_14, %c0_15] : memref<32x128xf32, #tpu.memory_space<vmem>>, vector<32x128xf32>
      tpu.vector_store %arg8[%c0_14, %c0_15], %17 {strides = array<i32>} : memref<32x128xf32, #tpu.memory_space<vmem>>, vector<32x128xf32>,
    } else {
    }
    %c0 = arith.constant 0 : index
    %c0_4 = arith.constant 0 : index
    %8 = vector.load %arg8[%c0, %c0_4] : memref<32x128xf32, #tpu.memory_space<vmem>>, vector<32x128xf32>
    %c0_5 = arith.constant 0 : index
    %c0_6 = arith.constant 0 : index
    %9 = vector.load %arg3[%c0_5, %c0_6] : memref<32x256xbf16, #tpu.memory_space<vmem>>, vector<32x256xbf16>
    %c0_7 = arith.constant 0 : index
    %c0_8 = arith.constant 0 : index
    %10 = vector.load %arg4[%c0_7, %c0_8] : memref<256x128xbf16, #tpu.memory_space<vmem>>, vector<256x128xbf16>
    %cst = arith.constant dense<0.000000e+00> : vector<32x128xf32>
    %11 = tpu.matmul %9, %10, %cst {dimension_numbers = #tpu.dot_dimension_numbers<[1], [0], [0], [1], [0, 0, 1, 1], [], []>} : vector<32x256xbf16>, vector<256x128xbf16>, vector<32x128xf32> -> vector<32x128xf32>
    %12 = arith.addf %8, %11 : vector<32x128xf32>
    %c0_9 = arith.constant 0 : index
    %c0_10 = arith.constant 0 : index
    %13 = vector.load %arg8[%c0_9, %c0_10] : memref<32x128xf32, #tpu.memory_space<vmem>>, vector<32x128xf32>
    tpu.vector_store %arg8[%c0_9, %c0_10], %12 {strides = array<i32>} : memref<32x128xf32, #tpu.memory_space<vmem>>, vector<32x128xf32>,
    %c0_i32_11 = arith.constant 0 : i32
    %14 = arith.cmpi eq, %arg2, %c0_i32_11 : i32
    %15 = arith.extui %14 : i1 to i32
    %c0_i32_12 = arith.constant 0 : i32
    %16 = arith.cmpi ne, %15, %c0_i32_12 : i32
    scf.if %16 {
      %c0_13 = arith.constant 0 : index
      %c0_14 = arith.constant 0 : index
      %17 = vector.load %arg8[%c0_13, %c0_14] : memref<32x128xf32, #tpu.memory_space<vmem>>, vector<32x128xf32>
      %18 = arith.truncf %17 : vector<32x128xf32> to vector<32x128xbf16>
      %c0_15 = arith.constant 0 : index
      %c0_16 = arith.constant 0 : index
      %19 = vector.load %arg5[%c0_15, %c0_16] : memref<32x128xbf16, #tpu.memory_space<vmem>>, vector<32x128xbf16>
      tpu.vector_store %arg5[%c0_15, %c0_16], %18 {strides = array<i32>} : memref<32x128xbf16, #tpu.memory_space<vmem>>, vector<32x128xbf16>,
      %c0_17 = arith.constant 0 : index
      %c0_18 = arith.constant 0 : index
      %20 = vector.load %arg6[%c0_17, %c0_18] : memref<1x128xf32, #tpu.memory_space<vmem>>, vector<1x128xf32>
      %cst_19 = arith.constant dense<0.000000e+00> : vector<128xf32>
      %21 = vector.multi_reduction <add>, %17, %cst_19 [0] : vector<32x128xf32> to vector<128xf32>
      %22 = vector.shape_cast %21 : vector<128xf32> to vector<1x128xf32>
      %23 = arith.addf %20, %22 : vector<1x128xf32>
      %c0_20 = arith.constant 0 : index
      %c0_21 = arith.constant 0 : index
      %24 = vector.load %arg6[%c0_20, %c0_21] : memref<1x128xf32, #tpu.memory_space<vmem>>, vector<1x128xf32>
      tpu.vector_store %arg6[%c0_20, %c0_21], %23 {strides = array<i32>} : memref<1x128xf32, #tpu.memory_space<vmem>>, vector<1x128xf32>,
      %c0_22 = arith.constant 0 : index
      %c0_23 = arith.constant 0 : index
      %25 = vector.load %arg7[%c0_22, %c0_23] : memref<1x128xf32, #tpu.memory_space<vmem>>, vector<1x128xf32>
      %26 = arith.mulf %17, %17 : vector<32x128xf32>
      %cst_24 = arith.constant dense<0.000000e+00> : vector<128xf32>
      %27 = vector.multi_reduction <add>, %26, %cst_24 [0] : vector<32x128xf32> to vector<128xf32>
      %28 = vector.shape_cast %27 : vector<128xf32> to vector<1x128xf32>
      %29 = arith.addf %25, %28 : vector<1x128xf32>
      %c0_25 = arith.constant 0 : index
      %c0_26 = arith.constant 0 : index
      %30 = vector.load %arg7[%c0_25, %c0_26] : memref<1x128xf32, #tpu.memory_space<vmem>>, vector<1x128xf32>
      tpu.vector_store %arg7[%c0_25, %c0_26], %29 {strides = array<i32>} : memref<1x128xf32, #tpu.memory_space<vmem>>, vector<1x128xf32>,
    } else {
    }
    return
  }
  func.func @transform_0(%arg0: i32, %arg1: i32, %arg2: i32) -> (i32, i32) {
    %c0_i32 = arith.constant 0 : i32
    return %arg1, %arg2 : i32, i32
  }
  func.func @transform_1(%arg0: i32, %arg1: i32, %arg2: i32) -> (i32, i32) {
    %c0_i32 = arith.constant 0 : i32
    return %arg2, %arg0 : i32, i32
  }
  func.func @transform_2(%arg0: i32, %arg1: i32, %arg2: i32) -> (i32, i32) {
    %c0_i32 = arith.constant 0 : i32
    return %arg1, %arg0 : i32, i32
  }
  func.func @transform_3(%arg0: i32, %arg1: i32, %arg2: i32) -> (i32, i32) {
    %c0_i32 = arith.constant 0 : i32
    %c0_i32_0 = arith.constant 0 : i32
    return %c0_i32, %arg0 : i32, i32
  }
  func.func @transform_4(%arg0: i32, %arg1: i32, %arg2: i32) -> (i32, i32) {
    %c0_i32 = arith.constant 0 : i32
    %c0_i32_0 = arith.constant 0 : i32
    return %c0_i32, %arg0 : i32, i32
  }
}

module attributes {stable_mosaic.version = 11 : i64} {
  func.func @_bn_lrelu_kernel(%arg0: i32, %arg1: i32, %arg2: memref<32x128xbf16, #tpu.memory_space<vmem>>, %arg3: memref<1x128xf32, #tpu.memory_space<vmem>>, %arg4: memref<1x128xf32, #tpu.memory_space<vmem>>, %arg5: memref<32x128xbf16, #tpu.memory_space<vmem>>) attributes {dimension_semantics = [#tpu.dimension_semantics<parallel>, #tpu.dimension_semantics<parallel>], iteration_bounds = array<i64: 1, 1>, scalar_prefetch = 0 : i64, scratch_operands = 0 : i64, tpu.core_type = #tpu.core_type<tc>, window_params = [{transform_indices = @transform_0, window_bounds = array<i64: 32, 128>}, {transform_indices = @transform_1, window_bounds = array<i64: 1, 128>}, {transform_indices = @transform_2, window_bounds = array<i64: 1, 128>}, {transform_indices = @transform_3, window_bounds = array<i64: 32, 128>}]} {
    %c0 = arith.constant 0 : index
    %c0_0 = arith.constant 0 : index
    %0 = vector.load %arg3[%c0, %c0_0] : memref<1x128xf32, #tpu.memory_space<vmem>>, vector<1x128xf32>
    %cst = arith.constant 3.125000e-02 : f32
    %1 = vector.broadcast %cst : f32 to vector<1x128xf32>
    %2 = arith.mulf %0, %1 : vector<1x128xf32>
    %c0_1 = arith.constant 0 : index
    %c0_2 = arith.constant 0 : index
    %3 = vector.load %arg4[%c0_1, %c0_2] : memref<1x128xf32, #tpu.memory_space<vmem>>, vector<1x128xf32>
    %cst_3 = arith.constant 3.125000e-02 : f32
    %4 = vector.broadcast %cst_3 : f32 to vector<1x128xf32>
    %5 = arith.mulf %3, %4 : vector<1x128xf32>
    %6 = arith.mulf %2, %2 : vector<1x128xf32>
    %7 = arith.subf %5, %6 : vector<1x128xf32>
    %cst_4 = arith.constant 0.000000e+00 : f32
    %8 = vector.broadcast %cst_4 : f32 to vector<1x128xf32>
    %9 = arith.maximumf %7, %8 : vector<1x128xf32>
    %cst_5 = arith.constant 9.99999974E-6 : f32
    %10 = vector.broadcast %cst_5 : f32 to vector<1x128xf32>
    %11 = arith.addf %9, %10 : vector<1x128xf32>
    %12 = math.rsqrt %11 : vector<1x128xf32>
    %c0_6 = arith.constant 0 : index
    %c0_7 = arith.constant 0 : index
    %13 = vector.load %arg2[%c0_6, %c0_7] : memref<32x128xbf16, #tpu.memory_space<vmem>>, vector<32x128xbf16>
    %14 = arith.extf %13 : vector<32x128xbf16> to vector<32x128xf32>
    %15 = vector.broadcast %2 : vector<1x128xf32> to vector<32x128xf32>
    %16 = arith.subf %14, %15 : vector<32x128xf32>
    %17 = vector.broadcast %12 : vector<1x128xf32> to vector<32x128xf32>
    %18 = arith.mulf %16, %17 : vector<32x128xf32>
    %cst_8 = arith.constant 0.000000e+00 : f32
    %19 = vector.broadcast %cst_8 : f32 to vector<32x128xf32>
    %20 = arith.cmpf oge, %18, %19 : vector<32x128xf32>
    %cst_9 = arith.constant 2.000000e-01 : f32
    %21 = vector.broadcast %cst_9 : f32 to vector<32x128xf32>
    %22 = arith.mulf %21, %18 : vector<32x128xf32>
    %23 = arith.select %20, %18, %22 : vector<32x128xi1>, vector<32x128xf32>
    %24 = arith.truncf %23 : vector<32x128xf32> to vector<32x128xbf16>
    %c0_10 = arith.constant 0 : index
    %c0_11 = arith.constant 0 : index
    %25 = vector.load %arg5[%c0_10, %c0_11] : memref<32x128xbf16, #tpu.memory_space<vmem>>, vector<32x128xbf16>
    tpu.vector_store %arg5[%c0_10, %c0_11], %24 {strides = array<i32>} : memref<32x128xbf16, #tpu.memory_space<vmem>>, vector<32x128xbf16>,
    return
  }
  func.func @transform_0(%arg0: i32, %arg1: i32) -> (i32, i32) {
    %c0_i32 = arith.constant 0 : i32
    return %arg0, %arg1 : i32, i32
  }
  func.func @transform_1(%arg0: i32, %arg1: i32) -> (i32, i32) {
    %c0_i32 = arith.constant 0 : i32
    %c0_i32_0 = arith.constant 0 : i32
    return %c0_i32, %arg1 : i32, i32
  }
  func.func @transform_2(%arg0: i32, %arg1: i32) -> (i32, i32) {
    %c0_i32 = arith.constant 0 : i32
    %c0_i32_0 = arith.constant 0 : i32
    return %c0_i32, %arg1 : i32, i32
  }
  func.func @transform_3(%arg0: i32, %arg1: i32) -> (i32, i32) {
    %c0_i32 = arith.constant 0 : i32
    return %arg0, %arg1 : i32, i32
  }
}

module attributes {stable_mosaic.version = 11 : i64} {
  func.func @_matmul_stats_kernel(%arg0: i32, %arg1: i32, %arg2: i32, %arg3: memref<32x512xbf16, #tpu.memory_space<vmem>>, %arg4: memref<512x128xbf16, #tpu.memory_space<vmem>>, %arg5: memref<32x128xbf16, #tpu.memory_space<vmem>>, %arg6: memref<1x128xf32, #tpu.memory_space<vmem>>, %arg7: memref<1x128xf32, #tpu.memory_space<vmem>>, %arg8: memref<32x128xf32, #tpu.memory_space<vmem>>) attributes {dimension_semantics = [#tpu.dimension_semantics<parallel>, #tpu.dimension_semantics<arbitrary>, #tpu.dimension_semantics<arbitrary>], iteration_bounds = array<i64: 1, 1, 1>, scalar_prefetch = 0 : i64, scratch_operands = 1 : i64, tpu.core_type = #tpu.core_type<tc>, window_params = [{transform_indices = @transform_0, window_bounds = array<i64: 32, 512>}, {transform_indices = @transform_1, window_bounds = array<i64: 512, 128>}, {transform_indices = @transform_2, window_bounds = array<i64: 32, 128>}, {transform_indices = @transform_3, window_bounds = array<i64: 1, 128>}, {transform_indices = @transform_4, window_bounds = array<i64: 1, 128>}]} {
    %c0_i32 = arith.constant 0 : i32
    %0 = arith.cmpi eq, %arg1, %c0_i32 : i32
    %c0_i32_0 = arith.constant 0 : i32
    %1 = arith.cmpi eq, %arg2, %c0_i32_0 : i32
    %2 = arith.andi %0, %1 : i1
    %3 = arith.extui %2 : i1 to i32
    %c0_i32_1 = arith.constant 0 : i32
    %4 = arith.cmpi ne, %3, %c0_i32_1 : i32
    scf.if %4 {
      %cst_13 = arith.constant 0.000000e+00 : f32
      %17 = vector.broadcast %cst_13 : f32 to vector<1x128xf32>
      %c0_14 = arith.constant 0 : index
      %c0_15 = arith.constant 0 : index
      %18 = vector.load %arg6[%c0_14, %c0_15] : memref<1x128xf32, #tpu.memory_space<vmem>>, vector<1x128xf32>
      tpu.vector_store %arg6[%c0_14, %c0_15], %17 {strides = array<i32>} : memref<1x128xf32, #tpu.memory_space<vmem>>, vector<1x128xf32>,
      %cst_16 = arith.constant 0.000000e+00 : f32
      %19 = vector.broadcast %cst_16 : f32 to vector<1x128xf32>
      %c0_17 = arith.constant 0 : index
      %c0_18 = arith.constant 0 : index
      %20 = vector.load %arg7[%c0_17, %c0_18] : memref<1x128xf32, #tpu.memory_space<vmem>>, vector<1x128xf32>
      tpu.vector_store %arg7[%c0_17, %c0_18], %19 {strides = array<i32>} : memref<1x128xf32, #tpu.memory_space<vmem>>, vector<1x128xf32>,
    } else {
    }
    %c0_i32_2 = arith.constant 0 : i32
    %5 = arith.cmpi eq, %arg2, %c0_i32_2 : i32
    %6 = arith.extui %5 : i1 to i32
    %c0_i32_3 = arith.constant 0 : i32
    %7 = arith.cmpi ne, %6, %c0_i32_3 : i32
    scf.if %7 {
      %cst_13 = arith.constant 0.000000e+00 : f32
      %17 = vector.broadcast %cst_13 : f32 to vector<32x128xf32>
      %c0_14 = arith.constant 0 : index
      %c0_15 = arith.constant 0 : index
      %18 = vector.load %arg8[%c0_14, %c0_15] : memref<32x128xf32, #tpu.memory_space<vmem>>, vector<32x128xf32>
      tpu.vector_store %arg8[%c0_14, %c0_15], %17 {strides = array<i32>} : memref<32x128xf32, #tpu.memory_space<vmem>>, vector<32x128xf32>,
    } else {
    }
    %c0 = arith.constant 0 : index
    %c0_4 = arith.constant 0 : index
    %8 = vector.load %arg8[%c0, %c0_4] : memref<32x128xf32, #tpu.memory_space<vmem>>, vector<32x128xf32>
    %c0_5 = arith.constant 0 : index
    %c0_6 = arith.constant 0 : index
    %9 = vector.load %arg3[%c0_5, %c0_6] : memref<32x512xbf16, #tpu.memory_space<vmem>>, vector<32x512xbf16>
    %c0_7 = arith.constant 0 : index
    %c0_8 = arith.constant 0 : index
    %10 = vector.load %arg4[%c0_7, %c0_8] : memref<512x128xbf16, #tpu.memory_space<vmem>>, vector<512x128xbf16>
    %cst = arith.constant dense<0.000000e+00> : vector<32x128xf32>
    %11 = tpu.matmul %9, %10, %cst {dimension_numbers = #tpu.dot_dimension_numbers<[1], [0], [0], [1], [0, 0, 1, 1], [], []>} : vector<32x512xbf16>, vector<512x128xbf16>, vector<32x128xf32> -> vector<32x128xf32>
    %12 = arith.addf %8, %11 : vector<32x128xf32>
    %c0_9 = arith.constant 0 : index
    %c0_10 = arith.constant 0 : index
    %13 = vector.load %arg8[%c0_9, %c0_10] : memref<32x128xf32, #tpu.memory_space<vmem>>, vector<32x128xf32>
    tpu.vector_store %arg8[%c0_9, %c0_10], %12 {strides = array<i32>} : memref<32x128xf32, #tpu.memory_space<vmem>>, vector<32x128xf32>,
    %c0_i32_11 = arith.constant 0 : i32
    %14 = arith.cmpi eq, %arg2, %c0_i32_11 : i32
    %15 = arith.extui %14 : i1 to i32
    %c0_i32_12 = arith.constant 0 : i32
    %16 = arith.cmpi ne, %15, %c0_i32_12 : i32
    scf.if %16 {
      %c0_13 = arith.constant 0 : index
      %c0_14 = arith.constant 0 : index
      %17 = vector.load %arg8[%c0_13, %c0_14] : memref<32x128xf32, #tpu.memory_space<vmem>>, vector<32x128xf32>
      %18 = arith.truncf %17 : vector<32x128xf32> to vector<32x128xbf16>
      %c0_15 = arith.constant 0 : index
      %c0_16 = arith.constant 0 : index
      %19 = vector.load %arg5[%c0_15, %c0_16] : memref<32x128xbf16, #tpu.memory_space<vmem>>, vector<32x128xbf16>
      tpu.vector_store %arg5[%c0_15, %c0_16], %18 {strides = array<i32>} : memref<32x128xbf16, #tpu.memory_space<vmem>>, vector<32x128xbf16>,
      %c0_17 = arith.constant 0 : index
      %c0_18 = arith.constant 0 : index
      %20 = vector.load %arg6[%c0_17, %c0_18] : memref<1x128xf32, #tpu.memory_space<vmem>>, vector<1x128xf32>
      %cst_19 = arith.constant dense<0.000000e+00> : vector<128xf32>
      %21 = vector.multi_reduction <add>, %17, %cst_19 [0] : vector<32x128xf32> to vector<128xf32>
      %22 = vector.shape_cast %21 : vector<128xf32> to vector<1x128xf32>
      %23 = arith.addf %20, %22 : vector<1x128xf32>
      %c0_20 = arith.constant 0 : index
      %c0_21 = arith.constant 0 : index
      %24 = vector.load %arg6[%c0_20, %c0_21] : memref<1x128xf32, #tpu.memory_space<vmem>>, vector<1x128xf32>
      tpu.vector_store %arg6[%c0_20, %c0_21], %23 {strides = array<i32>} : memref<1x128xf32, #tpu.memory_space<vmem>>, vector<1x128xf32>,
      %c0_22 = arith.constant 0 : index
      %c0_23 = arith.constant 0 : index
      %25 = vector.load %arg7[%c0_22, %c0_23] : memref<1x128xf32, #tpu.memory_space<vmem>>, vector<1x128xf32>
      %26 = arith.mulf %17, %17 : vector<32x128xf32>
      %cst_24 = arith.constant dense<0.000000e+00> : vector<128xf32>
      %27 = vector.multi_reduction <add>, %26, %cst_24 [0] : vector<32x128xf32> to vector<128xf32>
      %28 = vector.shape_cast %27 : vector<128xf32> to vector<1x128xf32>
      %29 = arith.addf %25, %28 : vector<1x128xf32>
      %c0_25 = arith.constant 0 : index
      %c0_26 = arith.constant 0 : index
      %30 = vector.load %arg7[%c0_25, %c0_26] : memref<1x128xf32, #tpu.memory_space<vmem>>, vector<1x128xf32>
      tpu.vector_store %arg7[%c0_25, %c0_26], %29 {strides = array<i32>} : memref<1x128xf32, #tpu.memory_space<vmem>>, vector<1x128xf32>,
    } else {
    }
    return
  }
  func.func @transform_0(%arg0: i32, %arg1: i32, %arg2: i32) -> (i32, i32) {
    %c0_i32 = arith.constant 0 : i32
    return %arg1, %arg2 : i32, i32
  }
  func.func @transform_1(%arg0: i32, %arg1: i32, %arg2: i32) -> (i32, i32) {
    %c0_i32 = arith.constant 0 : i32
    return %arg2, %arg0 : i32, i32
  }
  func.func @transform_2(%arg0: i32, %arg1: i32, %arg2: i32) -> (i32, i32) {
    %c0_i32 = arith.constant 0 : i32
    return %arg1, %arg0 : i32, i32
  }
  func.func @transform_3(%arg0: i32, %arg1: i32, %arg2: i32) -> (i32, i32) {
    %c0_i32 = arith.constant 0 : i32
    %c0_i32_0 = arith.constant 0 : i32
    return %c0_i32, %arg0 : i32, i32
  }
  func.func @transform_4(%arg0: i32, %arg1: i32, %arg2: i32) -> (i32, i32) {
    %c0_i32 = arith.constant 0 : i32
    %c0_i32_0 = arith.constant 0 : i32
    return %c0_i32, %arg0 : i32, i32
  }
}

module attributes {stable_mosaic.version = 11 : i64} {
  func.func @_matmul_bias_act_kernel(%arg0: i32, %arg1: i32, %arg2: i32, %arg3: memref<64x1024xbf16, #tpu.memory_space<vmem>>, %arg4: memref<1024x128xbf16, #tpu.memory_space<vmem>>, %arg5: memref<1x128xf32, #tpu.memory_space<vmem>>, %arg6: memref<64x128xf32, #tpu.memory_space<vmem>>, %arg7: memref<64x128xf32, #tpu.memory_space<vmem>>) attributes {dimension_semantics = [#tpu.dimension_semantics<parallel>, #tpu.dimension_semantics<parallel>, #tpu.dimension_semantics<arbitrary>], iteration_bounds = array<i64: 1, 1, 1>, scalar_prefetch = 0 : i64, scratch_operands = 1 : i64, tpu.core_type = #tpu.core_type<tc>, window_params = [{transform_indices = @transform_0, window_bounds = array<i64: 64, 1024>}, {transform_indices = @transform_1, window_bounds = array<i64: 1024, 128>}, {transform_indices = @transform_2, window_bounds = array<i64: 1, 128>}, {transform_indices = @transform_3, window_bounds = array<i64: 64, 128>}]} {
    %c0_i32 = arith.constant 0 : i32
    %0 = arith.cmpi eq, %arg2, %c0_i32 : i32
    %1 = arith.extui %0 : i1 to i32
    %c0_i32_0 = arith.constant 0 : i32
    %2 = arith.cmpi ne, %1, %c0_i32_0 : i32
    scf.if %2 {
      %cst_10 = arith.constant 0.000000e+00 : f32
      %12 = vector.broadcast %cst_10 : f32 to vector<64x128xf32>
      %c0_11 = arith.constant 0 : index
      %c0_12 = arith.constant 0 : index
      %13 = vector.load %arg7[%c0_11, %c0_12] : memref<64x128xf32, #tpu.memory_space<vmem>>, vector<64x128xf32>
      tpu.vector_store %arg7[%c0_11, %c0_12], %12 {strides = array<i32>} : memref<64x128xf32, #tpu.memory_space<vmem>>, vector<64x128xf32>,
    } else {
    }
    %c0 = arith.constant 0 : index
    %c0_1 = arith.constant 0 : index
    %3 = vector.load %arg7[%c0, %c0_1] : memref<64x128xf32, #tpu.memory_space<vmem>>, vector<64x128xf32>
    %c0_2 = arith.constant 0 : index
    %c0_3 = arith.constant 0 : index
    %4 = vector.load %arg3[%c0_2, %c0_3] : memref<64x1024xbf16, #tpu.memory_space<vmem>>, vector<64x1024xbf16>
    %c0_4 = arith.constant 0 : index
    %c0_5 = arith.constant 0 : index
    %5 = vector.load %arg4[%c0_4, %c0_5] : memref<1024x128xbf16, #tpu.memory_space<vmem>>, vector<1024x128xbf16>
    %cst = arith.constant dense<0.000000e+00> : vector<64x128xf32>
    %6 = tpu.matmul %4, %5, %cst {dimension_numbers = #tpu.dot_dimension_numbers<[1], [0], [0], [1], [0, 0, 1, 1], [], []>} : vector<64x1024xbf16>, vector<1024x128xbf16>, vector<64x128xf32> -> vector<64x128xf32>
    %7 = arith.addf %3, %6 : vector<64x128xf32>
    %c0_6 = arith.constant 0 : index
    %c0_7 = arith.constant 0 : index
    %8 = vector.load %arg7[%c0_6, %c0_7] : memref<64x128xf32, #tpu.memory_space<vmem>>, vector<64x128xf32>
    tpu.vector_store %arg7[%c0_6, %c0_7], %7 {strides = array<i32>} : memref<64x128xf32, #tpu.memory_space<vmem>>, vector<64x128xf32>,
    %c0_i32_8 = arith.constant 0 : i32
    %9 = arith.cmpi eq, %arg2, %c0_i32_8 : i32
    %10 = arith.extui %9 : i1 to i32
    %c0_i32_9 = arith.constant 0 : i32
    %11 = arith.cmpi ne, %10, %c0_i32_9 : i32
    scf.if %11 {
      %c0_10 = arith.constant 0 : index
      %c0_11 = arith.constant 0 : index
      %12 = vector.load %arg7[%c0_10, %c0_11] : memref<64x128xf32, #tpu.memory_space<vmem>>, vector<64x128xf32>
      %c0_12 = arith.constant 0 : index
      %c0_13 = arith.constant 0 : index
      %13 = vector.load %arg5[%c0_12, %c0_13] : memref<1x128xf32, #tpu.memory_space<vmem>>, vector<1x128xf32>
      %14 = vector.broadcast %13 : vector<1x128xf32> to vector<64x128xf32>
      %15 = arith.addf %12, %14 : vector<64x128xf32>
      %c0_14 = arith.constant 0 : index
      %c0_15 = arith.constant 0 : index
      %16 = vector.load %arg6[%c0_14, %c0_15] : memref<64x128xf32, #tpu.memory_space<vmem>>, vector<64x128xf32>
      tpu.vector_store %arg6[%c0_14, %c0_15], %15 {strides = array<i32>} : memref<64x128xf32, #tpu.memory_space<vmem>>, vector<64x128xf32>,
    } else {
    }
    return
  }
  func.func @transform_0(%arg0: i32, %arg1: i32, %arg2: i32) -> (i32, i32) {
    %c0_i32 = arith.constant 0 : i32
    return %arg0, %arg2 : i32, i32
  }
  func.func @transform_1(%arg0: i32, %arg1: i32, %arg2: i32) -> (i32, i32) {
    %c0_i32 = arith.constant 0 : i32
    return %arg2, %arg1 : i32, i32
  }
  func.func @transform_2(%arg0: i32, %arg1: i32, %arg2: i32) -> (i32, i32) {
    %c0_i32 = arith.constant 0 : i32
    %c0_i32_0 = arith.constant 0 : i32
    return %c0_i32, %arg1 : i32, i32
  }
  func.func @transform_3(%arg0: i32, %arg1: i32, %arg2: i32) -> (i32, i32) {
    %c0_i32 = arith.constant 0 : i32
    return %arg0, %arg1 : i32, i32
  }
}

</mosaic_0001>

<bundles_post_ra>
// kernel: nlayer_discriminator_forward.8
= control target key start
LH: loop header
LB: loop body
LE: loop exit
PB: predicated region body
PF: predicated region fallthrough
CT: control target
= control target key end

     0   :  { %v859_v0 = vmov 0.0   ;;  %vm860_vm0 = vmmov 0   ;;  %s1036_s1 = inlined_call_operand.vmem [shape: bf16[128,128], index: 1, kind: input, shape index: {}]   ;;  %s1037_s0 = inlined_call_operand.vmem [shape: bf16[176,128], index: 0, kind: input, shape index: {}]   ;;  %s1038_s2 = inlined_call_operand.vmem [shape: f32[1,128], index: 2, kind: input, shape index: {}]   ;;  %s1039_s3 = inlined_call_operand.vmem [shape: bf16[176,128], index: 3, kind: output, shape index: {}]  }
   0x1   :  { %762 = vmatprep.subr.bf16.mxu0 %v859_v0  ;;  %v840_v1 = vld [vmem:[%s1036_s1] sm:$0xff]   ;;  %822 = vmatprep.subr.bf16.mxu1 %v859_v0  ;;  %v841_v2 = vld [vmem:[%s1036_s1 + $0x8] sm:$0xff]   ;;  %v842_v3 = vld [vmem:[%s1036_s1 + $0x10] sm:$0xff]  }
   0x2   :  { %778 = vmatprep.mubr.msk.bf16.mxu0 %vm860_vm0, %v859_v0  ;;  %802 = vmatprep.mubr.msk.bf16.mxu1 %vm860_vm0, %v859_v0  ;;  %v843_v4 = vld [vmem:[%s1036_s1 + $0x18] sm:$0xff]   ;;  %v844_v5 = vld [vmem:[%s1036_s1 + $0x20] sm:$0xff]   ;;  %v845_v6 = vld [vmem:[%s1036_s1 + $0x28] sm:$0xff]  }
   0x3   :  { %763 = vmatpush3.bf16.msra.mxu0 %v840_v1  ;;  %830 = vmatpush3.bf16.msra.mxu1 %v840_v1  ;;  %v846_v7 = vld [vmem:[%s1036_s1 + $0x30] sm:$0xff]   ;;  %v847_v8 = vld [vmem:[%s1036_s1 + $0x38] sm:$0xff]   ;;  %v848_v9 = vld [vmem:[%s1037_s0] sm:$0xff]  }
   0x4   :  { %764 = vmatprep.subr.bf16.mxu0 %v859_v0  ;;  %823 = vmatprep.subr.bf16.mxu1 %v859_v0  ;;  %v849_v10 = vld [vmem:[%s1037_s0 + $0x30] sm:$0xff]   ;;  %v850_v11 = vld [vmem:[%s1037_s0 + $0x8] sm:$0xff]   ;;  %v851_v12 = vld [vmem:[%s1037_s0 + $0x38] sm:$0xff]  }
   0x5   :  { %v852_v13 = vld [vmem:[%s1037_s0 + $0x10] sm:$0xff]   ;;  %v853_v14 = vld [vmem:[%s1037_s0 + $0x40] sm:$0xff]   ;;  %v854_v15 = vld [vmem:[%s1037_s0 + $0x18] sm:$0xff]  }
   0x6   :  { %v855_v16 = vld [vmem:[%s1037_s0 + $0x48] sm:$0xff]   ;;  %v856_v17 = vld [vmem:[%s1037_s0 + $0x20] sm:$0xff]   ;;  %v857_v18 = vld [vmem:[%s1037_s0 + $0x50] sm:$0xff]  }
   0x7   :  { %765 = vmatpush3.bf16.msra.mxu0 %v841_v2  ;;  %831 = vmatpush3.bf16.msra.mxu1 %v841_v2  ;;  %v858_v19 = vld [vmem:[%s1037_s0 + $0x28] sm:$0xff]   ;;  %v979_v20 = vld [vmem:[%s1038_s2] ss:$0 sm:$0xff] }
   0x8   :  { %766 = vmatprep.subr.bf16.mxu0 %v859_v0  ;;  %824 = vmatprep.subr.bf16.mxu1 %v859_v0 }
   0xb   :  { %767 = vmatpush3.bf16.msra.mxu0 %v842_v3  ;;  %832 = vmatpush3.bf16.msra.mxu1 %v842_v3 }
   0xc   :  { %768 = vmatprep.subr.bf16.mxu0 %v859_v0  ;;  %825 = vmatprep.subr.bf16.mxu1 %v859_v0 }
   0xf   :  { %769 = vmatpush3.bf16.msra.mxu0 %v843_v4  ;;  %833 = vmatpush3.bf16.msra.mxu1 %v843_v4 }
  0x10   :  { %770 = vmatprep.subr.bf16.mxu0 %v859_v0  ;;  %826 = vmatprep.subr.bf16.mxu1 %v859_v0 }
  0x13   :  { %771 = vmatpush3.bf16.msra.mxu0 %v844_v5  ;;  %834 = vmatpush3.bf16.msra.mxu1 %v844_v5 }
  0x14   :  { %772 = vmatprep.subr.bf16.mxu0 %v859_v0  ;;  %827 = vmatprep.subr.bf16.mxu1 %v859_v0 }
  0x17   :  { %773 = vmatpush3.bf16.msra.mxu0 %v845_v6  ;;  %835 = vmatpush3.bf16.msra.mxu1 %v845_v6 }
  0x18   :  { %774 = vmatprep.subr.bf16.mxu0 %v859_v0  ;;  %828 = vmatprep.subr.bf16.mxu1 %v859_v0 }
  0x1b   :  { %775 = vmatpush3.bf16.msra.mxu0 %v846_v7  ;;  %836 = vmatpush3.bf16.msra.mxu1 %v846_v7 }
  0x1c   :  { %776 = vmatprep.subr.bf16.mxu0 %v859_v0  ;;  %829 = vmatprep.subr.bf16.mxu1 %v859_v0 }
  0x1f   :  { %777 = vmatpush3.bf16.msra.mxu0 %v847_v8  ;;  %837 = vmatpush3.bf16.msra.mxu1 %v847_v8 }
  0x22   :  { %779 = vmatmul.mubr.bf16.vlgmr.msra.gmra.mrb[0].mxu0 %v848_v9  ;;  %803 = vmatmul.mubr.bf16.vlgmr.msra.gmra.mrb[0].mxu1 %v849_v10 }
  0x23   :  { %782 = vmatprep.mubr.msk.bf16.mxu0 %vm860_vm0, %v859_v0  ;;  %806 = vmatprep.mubr.msk.bf16.mxu1 %vm860_vm0, %v859_v0 }
  0x2a   :  { %783 = vmatmul.mubr.bf16.gmra.mrb[4].mxu0 %v850_v11  ;;  %807 = vmatmul.mubr.bf16.gmra.mrb[4].mxu1 %v851_v12 }
  0x2b   :  { %786 = vmatprep.mubr.msk.bf16.mxu0 %vm860_vm0, %v859_v0  ;;  %810 = vmatprep.mubr.msk.bf16.mxu1 %vm860_vm0, %v859_v0 }
  0x32   :  { %787 = vmatmul.mubr.bf16.gmra.mrb[8].mxu0 %v852_v13  ;;  %811 = vmatmul.mubr.bf16.gmra.mrb[8].mxu1 %v853_v14 }
  0x33   :  { %790 = vmatprep.mubr.msk.bf16.mxu0 %vm860_vm0, %v859_v0  ;;  %814 = vmatprep.mubr.msk.bf16.mxu1 %vm860_vm0, %v859_v0 }
  0x3a   :  { %791 = vmatmul.mubr.bf16.gmra.mrb[12].mxu0 %v854_v15  ;;  %815 = vmatmul.mubr.bf16.gmra.mrb[12].mxu1 %v855_v16 }
  0x3b   :  { %794 = vmatprep.mubr.msk.bf16.mxu0 %vm860_vm0, %v859_v0  ;;  %818 = vmatprep.mubr.msk.bf16.mxu1 %vm860_vm0, %v859_v0 }
  0x42   :  { %795 = vmatmul.mubr.bf16.gmra.mrb[16].mxu0 %v856_v17  ;;  %819 = vmatmul.mubr.bf16.gmra.mrb[16].mxu1 %v857_v18 }
  0x43   :  { %798 = vmatprep.mubr.msk.bf16.mxu0 %vm860_vm0, %v859_v0 }
  0x4a   :  { %799 = vmatmul.mubr.bf16.gmra.mrb[20].mxu0 %v858_v19 }
  0xf5   :  { %v249_v21 = vpop.f32.mrb[0].mxu0  ;;  %v297_v22 = vpop.f32.mrb[0].mxu1 }
  0xf6   :  { %v412_v23 = vadd.f32 %v979_v20, %v249_v21  ;;  %v780_v24 = vpop.f32.mrb[1].mxu0  ;;  %v424_v25 = vadd.f32 %v979_v20, %v297_v22  ;;  %v804_v26 = vpop.f32.mrb[1].mxu1 }
  0xf7   :  { %v252_v27 = vpop.f32.mrb[2].mxu0  ;;  %v300_v28 = vpop.f32.mrb[2].mxu1 }
  0xf8   :  { %v456_v29 = vmul.f32 0.2, %v412_v23  ;;  %v413_v30 = vadd.f32 %v979_v20, %v252_v27  ;;  %v781_v31 = vpop.f32.mrb[3].mxu0  ;;  %vm446_vm1 = vcmp.ge.f32.partialorder %v424_v25, 0.0  ;;  %v805_v32 = vpop.f32.mrb[3].mxu1  ;;  %vm434_vm2 = vcmp.ge.f32.partialorder %v412_v23, 0.0 }
  0xf9   :  { %v468_v33 = vmul.f32 0.2, %v424_v25  ;;  %v425_v34 = vadd.f32 %v979_v20, %v300_v28 }
  0xfa   :  { %vm435_vm3 = vcmp.ge.f32.partialorder %v413_v30, 0.0  ;;  %v457_v35 = vmul.f32 0.2, %v413_v30  ;;  %v478_v38 = vsel %vm434_vm2, %v412_v23, %v456_v29 }
  0xfb   :  { %v490_v36 = vsel %vm446_vm1, %v424_v25, %v468_v33  ;;  %vm447_vm4 = vcmp.ge.f32.partialorder %v425_v34, 0.0  ;;  %v469_v37 = vmul.f32 0.2, %v425_v34 }
  0xfc   :  { %v479_v39 = vsel %vm435_vm3, %v413_v30, %v457_v35 }
  0xfd   :  { %v681_v40 = vpack.c.bf16 %v479_v39, %v478_v38  ;;  %v491_v41 = vsel %vm447_vm4, %v425_v34, %v469_v37  ;;  %v257_v42 = vpop.f32.mrb[4].mxu0  ;;  %v305_v43 = vpop.f32.mrb[4].mxu1 }
  0xfe   :  { %v711_v44 = vpack.c.bf16 %v491_v41, %v490_v36  ;;  %v414_v45 = vadd.f32 %v979_v20, %v257_v42  ;;  %v784_v46 = vpop.f32.mrb[5].mxu0  ;;  %v426_v47 = vadd.f32 %v979_v20, %v305_v43  ;;  %v808_v48 = vpop.f32.mrb[5].mxu1 }
  0xff   :  { %682 = vst [vmem:[%s1039_s3] sm:$0xff] %v681_v40   ;;  %v260_v49 = vpop.f32.mrb[6].mxu0  ;;  %v308_v50 = vpop.f32.mrb[6].mxu1 }
 0x100   :  { %738 = vst [vmem:[%s1039_s3 + $0x30] sm:$0xff] %v711_v44   ;;  %v458_v51 = vmul.f32 0.2, %v414_v45  ;;  %v415_v52 = vadd.f32 %v979_v20, %v260_v49  ;;  %v785_v53 = vpop.f32.mrb[7].mxu0  ;;  %vm448_vm5 = vcmp.ge.f32.partialorder %v426_v47, 0.0  ;;  %v809_v54 = vpop.f32.mrb[7].mxu1  ;;  %v427_v56 = vadd.f32 %v979_v20, %v308_v50 }
 0x101   :  { %vm436_vm6 = vcmp.ge.f32.partialorder %v414_v45, 0.0  ;;  %v470_v55 = vmul.f32 0.2, %v426_v47 }
 0x102   :  { %vm437_vm7 = vcmp.ge.f32.partialorder %v415_v52, 0.0  ;;  %v459_v57 = vmul.f32 0.2, %v415_v52  ;;  %vm449_vm8 = vcmp.ge.f32.partialorder %v427_v56, 0.0  ;;  %v471_v59 = vmul.f32 0.2, %v427_v56 }
 0x103   :  { %v492_v58 = vsel %vm448_vm5, %v426_v47, %v470_v55  ;;  %v480_v60 = vsel %vm436_vm6, %v414_v45, %v458_v51 }
 0x104   :  { %v481_v61 = vsel %vm437_vm7, %v415_v52, %v459_v57  ;;  %v493_v63 = vsel %vm449_vm8, %v427_v56, %v471_v59 }
 0x105   :  { %v686_v62 = vpack.c.bf16 %v481_v61, %v480_v60  ;;  %v265_v0 = vpop.f32.mrb[8].mxu0  ;;  %v313_v1 = vpop.f32.mrb[8].mxu1  ;;  %v716_v2 = vpack.c.bf16 %v493_v63, %v492_v58 }
 0x106   :  { %v416_v3 = vadd.f32 %v979_v20, %v265_v0  ;;  %v788_v4 = vpop.f32.mrb[9].mxu0  ;;  %v428_v5 = vadd.f32 %v979_v20, %v313_v1  ;;  %v812_v6 = vpop.f32.mrb[9].mxu1 }
 0x107   :  { %733 = vst [vmem:[%s1039_s3 + $0x8] sm:$0xff] %v686_v62   ;;  %v268_v7 = vpop.f32.mrb[10].mxu0  ;;  %v316_v8 = vpop.f32.mrb[10].mxu1  ;;  %739 = vst [vmem:[%s1039_s3 + $0x38] sm:$0xff] %v716_v2  }
 0x108   :  { %v460_v9 = vmul.f32 0.2, %v416_v3  ;;  %v417_v10 = vadd.f32 %v979_v20, %v268_v7  ;;  %v789_v11 = vpop.f32.mrb[11].mxu0  ;;  %vm450_vm9 = vcmp.ge.f32.partialorder %v428_v5, 0.0  ;;  %v813_v12 = vpop.f32.mrb[11].mxu1  ;;  %vm438_vm10 = vcmp.ge.f32.partialorder %v416_v3, 0.0 }
 0x109   :  { %v472_v13 = vmul.f32 0.2, %v428_v5  ;;  %v429_v14 = vadd.f32 %v979_v20, %v316_v8 }
 0x10a   :  { %vm439_vm11 = vcmp.ge.f32.partialorder %v417_v10, 0.0  ;;  %v461_v15 = vmul.f32 0.2, %v417_v10  ;;  %v482_v18 = vsel %vm438_vm10, %v416_v3, %v460_v9 }
 0x10b   :  { %v494_v16 = vsel %vm450_vm9, %v428_v5, %v472_v13  ;;  %vm451_vm12 = vcmp.ge.f32.partialorder %v429_v14, 0.0  ;;  %v473_v17 = vmul.f32 0.2, %v429_v14 }
 0x10c   :  { %v483_v19 = vsel %vm439_vm11, %v417_v10, %v461_v15 }
 0x10d   :  { %v691_v21 = vpack.c.bf16 %v483_v19, %v482_v18  ;;  %v495_v22 = vsel %vm451_vm12, %v429_v14, %v473_v17  ;;  %v273_v23 = vpop.f32.mrb[12].mxu0  ;;  %v321_v24 = vpop.f32.mrb[12].mxu1 }
 0x10e   :  { %v721_v25 = vpack.c.bf16 %v495_v22, %v494_v16  ;;  %v418_v26 = vadd.f32 %v979_v20, %v273_v23  ;;  %v792_v27 = vpop.f32.mrb[13].mxu0  ;;  %v430_v28 = vadd.f32 %v979_v20, %v321_v24  ;;  %v816_v29 = vpop.f32.mrb[13].mxu1 }
 0x10f   :  { %734 = vst [vmem:[%s1039_s3 + $0x10] sm:$0xff] %v691_v21   ;;  %v276_v30 = vpop.f32.mrb[14].mxu0  ;;  %v324_v31 = vpop.f32.mrb[14].mxu1 }
 0x110   :  { %740 = vst [vmem:[%s1039_s3 + $0x40] sm:$0xff] %v721_v25   ;;  %v462_v32 = vmul.f32 0.2, %v418_v26  ;;  %v419_v33 = vadd.f32 %v979_v20, %v276_v30  ;;  %v793_v34 = vpop.f32.mrb[15].mxu0  ;;  %vm452_vm13 = vcmp.ge.f32.partialorder %v430_v28, 0.0  ;;  %v817_v35 = vpop.f32.mrb[15].mxu1  ;;  %v431_v37 = vadd.f32 %v979_v20, %v324_v31 }
 0x111   :  { %vm440_vm14 = vcmp.ge.f32.partialorder %v418_v26, 0.0  ;;  %v474_v36 = vmul.f32 0.2, %v430_v28 }
 0x112   :  { %vm441_vm15 = vcmp.ge.f32.partialorder %v419_v33, 0.0  ;;  %v463_v38 = vmul.f32 0.2, %v419_v33  ;;  %vm453_vm0 = vcmp.ge.f32.partialorder %v431_v37, 0.0  ;;  %v475_v40 = vmul.f32 0.2, %v431_v37 }
 0x113   :  { %v496_v39 = vsel %vm452_vm13, %v430_v28, %v474_v36  ;;  %v484_v41 = vsel %vm440_vm14, %v418_v26, %v462_v32 }
 0x114   :  { %v485_v42 = vsel %vm441_vm15, %v419_v33, %v463_v38  ;;  %v497_v44 = vsel %vm453_vm0, %v431_v37, %v475_v40 }
 0x115   :  { %v696_v43 = vpack.c.bf16 %v485_v42, %v484_v41  ;;  %v281_v45 = vpop.f32.mrb[16].mxu0  ;;  %v329_v46 = vpop.f32.mrb[16].mxu1  ;;  %v726_v47 = vpack.c.bf16 %v497_v44, %v496_v39 }
 0x116   :  { %v420_v48 = vadd.f32 %v979_v20, %v281_v45  ;;  %v796_v49 = vpop.f32.mrb[17].mxu0  ;;  %v432_v50 = vadd.f32 %v979_v20, %v329_v46  ;;  %v820_v51 = vpop.f32.mrb[17].mxu1 }
 0x117   :  { %735 = vst [vmem:[%s1039_s3 + $0x18] sm:$0xff] %v696_v43   ;;  %v284_v52 = vpop.f32.mrb[18].mxu0  ;;  %v332_v53 = vpop.f32.mrb[18].mxu1  ;;  %741 = vst [vmem:[%s1039_s3 + $0x48] sm:$0xff] %v726_v47  }
 0x118   :  { %v464_v54 = vmul.f32 0.2, %v420_v48  ;;  %v421_v55 = vadd.f32 %v979_v20, %v284_v52  ;;  %v797_v56 = vpop.f32.mrb[19].mxu0  ;;  %vm454_vm1 = vcmp.ge.f32.partialorder %v432_v50, 0.0  ;;  %v821_v57 = vpop.f32.mrb[19].mxu1  ;;  %vm442_vm2 = vcmp.ge.f32.partialorder %v420_v48, 0.0 }
 0x119   :  { %v476_v58 = vmul.f32 0.2, %v432_v50  ;;  %v433_v59 = vadd.f32 %v979_v20, %v332_v53 }
 0x11a   :  { %vm443_vm3 = vcmp.ge.f32.partialorder %v421_v55, 0.0  ;;  %v465_v60 = vmul.f32 0.2, %v421_v55  ;;  %v486_v63 = vsel %vm442_vm2, %v420_v48, %v464_v54 }
 0x11b   :  { %v498_v61 = vsel %vm454_vm1, %v432_v50, %v476_v58  ;;  %vm455_vm4 = vcmp.ge.f32.partialorder %v433_v59, 0.0  ;;  %v477_v62 = vmul.f32 0.2, %v433_v59 }
 0x11c   :  { %v487_v0 = vsel %vm443_vm3, %v421_v55, %v465_v60 }
 0x11d   :  { %v701_v1 = vpack.c.bf16 %v487_v0, %v486_v63  ;;  %v499_v2 = vsel %vm455_vm4, %v433_v59, %v477_v62  ;;  %v289_v3 = vpop.f32.mrb[20].mxu0 }
 0x11e   :  { %v731_v4 = vpack.c.bf16 %v499_v2, %v498_v61  ;;  %v422_v5 = vadd.f32 %v979_v20, %v289_v3  ;;  %v800_v6 = vpop.f32.mrb[21].mxu0 }
 0x11f   :  { %736 = vst [vmem:[%s1039_s3 + $0x20] sm:$0xff] %v701_v1   ;;  %v292_v7 = vpop.f32.mrb[22].mxu0 }
 0x120   :  { %742 = vst [vmem:[%s1039_s3 + $0x50] sm:$0xff] %v731_v4   ;;  %v466_v8 = vmul.f32 0.2, %v422_v5  ;;  %v423_v9 = vadd.f32 %v979_v20, %v292_v7  ;;  %v801_v10 = vpop.f32.mrb[23].mxu0  ;;  %vm444_vm5 = vcmp.ge.f32.partialorder %v422_v5, 0.0 }
 0x122   :  { %vm445_vm6 = vcmp.ge.f32.partialorder %v423_v9, 0.0  ;;  %v467_v11 = vmul.f32 0.2, %v423_v9  ;;  %v488_v12 = vsel %vm444_vm5, %v422_v5, %v466_v8 }
 0x124   :  { %v489_v13 = vsel %vm445_vm6, %v423_v9, %v467_v11 }
 0x125   :  { %v706_v14 = vpack.c.bf16 %v489_v13, %v488_v12 }
 0x127   :  { %737 = vst [vmem:[%s1039_s3 + $0x28] sm:$0xff] %v706_v14  }

// kernel: nlayer_discriminator_forward.10
= control target key start
LH: loop header
LB: loop body
LE: loop exit
PB: predicated region body
PF: predicated region fallthrough
CT: control target
= control target key end

     0   :  { %v40_v5 = vlaneseq  ;;  %s245_s1 = inlined_call_operand.vmem [shape: f32[1,128], index: 1, kind: input, shape index: {}]   ;;  %s246_s2 = inlined_call_operand.vmem [shape: f32[1,128], index: 2, kind: input, shape index: {}]   ;;  %s247_s0 = inlined_call_operand.vmem [shape: bf16[64,128], index: 0, kind: input, shape index: {}]   ;;  %s248_s3 = inlined_call_operand.vmem [shape: bf16[64,128], index: 3, kind: output, shape index: {}]  }
   0x1   :  { %v14_v0 = vld [vmem:[%s245_s1] sm:$0x1]  ;;  %v187_v12 = vld [vmem:[%s247_s0 + $0x8] sm:$0xff]   ;;  %v188_v13 = vld [vmem:[%s247_s0 + $0x10] sm:$0xff]  }
   0x2   :  { %v16_v1 = vld [vmem:[%s246_s2] sm:$0x1]  ;;  %v15_v2 = vmul.f32 0.02, %v14_v0  ;;  %v41_v8 = vshrl.u32 %v40_v5, 7  ;;  %v189_v14 = vld [vmem:[%s247_s0 + $0x18] sm:$0xff]   ;;  %v157_v18 = vunpack.c.l.bf16 %v187_v12  ;;  %v158_v19 = vunpack.c.h.bf16 %v187_v12 }
   0x3   :  { %v17_v3 = vmul.f32 0.02, %v16_v1  ;;  %v152_v10 = vld [vmem:[%s247_s0] sm:$0xff]   ;;  %v161_v20 = vunpack.c.l.bf16 %v188_v13  ;;  %v162_v21 = vunpack.c.h.bf16 %v188_v13  ;;  %v165_v22 = vunpack.c.l.bf16 %v189_v14 }
   0x4   :  { %v18_v4 = vmul.f32 %v15_v2, %v15_v2  ;;  %v42_v11 = vsub.s32 0, %v41_v8  ;;  %v153_v15 = vunpack.c.l.bf16 %v152_v10  ;;  %v154_v16 = vunpack.c.h.bf16 %v152_v10 }
   0x5   :  { %v166_v23 = vunpack.c.h.bf16 %v189_v14 }
   0x6   :  { %v19_v6 = vsub.f32 %v17_v3, %v18_v4  ;;  %v43_v17 = vrot.slane %v15_v2, %v42_v11 }
   0x8   :  { %v20_v7 = vmax.f32 %v19_v6, 0.0  ;;  %v45_v24 = vsub.f32 %v153_v15, %v43_v17  ;;  %v46_v25 = vsub.f32 %v154_v16, %v43_v17  ;;  %v47_v26 = vsub.f32 %v157_v18, %v43_v17 }
   0x9   :  { %v48_v27 = vsub.f32 %v158_v19, %v43_v17  ;;  %v49_v29 = vsub.f32 %v161_v20, %v43_v17  ;;  %v50_v30 = vsub.f32 %v162_v21, %v43_v17  ;;  %v51_v31 = vsub.f32 %v165_v22, %v43_v17 }
   0xa   :  { %v21_v9 = vadd.f32 1e-05, %v20_v7  ;;  %v52_v32 = vsub.f32 %v166_v23, %v43_v17 }
   0xc   :  { %193 = vrsqrt.f32 %v21_v9 }
  0x16   :  { %v194_v28 = vpop.eup %193 }
  0x17   :  { %v57_v33 = vrot.slane %v194_v28, %v42_v11 }
  0x19   :  { %v59_v34 = vmul.f32 %v57_v33, %v45_v24  ;;  %v60_v35 = vmul.f32 %v57_v33, %v46_v25  ;;  %v61_v36 = vmul.f32 %v57_v33, %v47_v26  ;;  %v62_v37 = vmul.f32 %v57_v33, %v48_v27 }
  0x1a   :  { %v63_v38 = vmul.f32 %v57_v33, %v49_v29  ;;  %v64_v39 = vmul.f32 %v57_v33, %v50_v30  ;;  %v65_v40 = vmul.f32 %v57_v33, %v51_v31  ;;  %v66_v41 = vmul.f32 %v57_v33, %v52_v32 }
  0x1b   :  { %vm67_vm0 = vcmp.ge.f32.partialorder %v59_v34, 0.0  ;;  %vm68_vm1 = vcmp.ge.f32.partialorder %v60_v35, 0.0  ;;  %v75_v42 = vmul.f32 0.2, %v59_v34  ;;  %v76_v43 = vmul.f32 0.2, %v60_v35 }
  0x1c   :  { %vm69_vm2 = vcmp.ge.f32.partialorder %v61_v36, 0.0  ;;  %vm70_vm3 = vcmp.ge.f32.partialorder %v62_v37, 0.0  ;;  %v77_v44 = vmul.f32 0.2, %v61_v36  ;;  %v78_v45 = vmul.f32 0.2, %v62_v37 }
  0x1d   :  { %v83_v46 = vsel %vm67_vm0, %v59_v34, %v75_v42  ;;  %v84_v47 = vsel %vm68_vm1, %v60_v35, %v76_v43  ;;  %vm71_vm4 = vcmp.ge.f32.partialorder %v63_v38, 0.0  ;;  %vm72_vm5 = vcmp.ge.f32.partialorder %v64_v39, 0.0 }
  0x1e   :  { %v170_v48 = vpack.c.bf16 %v84_v47, %v83_v46  ;;  %v85_v49 = vsel %vm69_vm2, %v61_v36, %v77_v44  ;;  %v86_v50 = vsel %vm70_vm3, %v62_v37, %v78_v45  ;;  %v79_v51 = vmul.f32 0.2, %v63_v38 }
  0x1f   :  { %v175_v52 = vpack.c.bf16 %v86_v50, %v85_v49  ;;  %v80_v53 = vmul.f32 0.2, %v64_v39  ;;  %vm73_vm6 = vcmp.ge.f32.partialorder %v65_v40, 0.0  ;;  %vm74_vm7 = vcmp.ge.f32.partialorder %v66_v41, 0.0 }
  0x20   :  { %171 = vst [vmem:[%s248_s3] sm:$0xff] %v170_v48   ;;  %v87_v54 = vsel %vm71_vm4, %v63_v38, %v79_v51  ;;  %v81_v55 = vmul.f32 0.2, %v65_v40  ;;  %v82_v56 = vmul.f32 0.2, %v66_v41 }
  0x21   :  { %190 = vst [vmem:[%s248_s3 + $0x8] sm:$0xff] %v175_v52   ;;  %v88_v57 = vsel %vm72_vm5, %v64_v39, %v80_v53 }
  0x22   :  { %v180_v58 = vpack.c.bf16 %v88_v57, %v87_v54  ;;  %v89_v59 = vsel %vm73_vm6, %v65_v40, %v81_v55  ;;  %v90_v60 = vsel %vm74_vm7, %v66_v41, %v82_v56 }
  0x23   :  { %v185_v61 = vpack.c.bf16 %v90_v60, %v89_v59 }
  0x24   :  { %191 = vst [vmem:[%s248_s3 + $0x10] sm:$0xff] %v180_v58  }
  0x25   :  { %192 = vst [vmem:[%s248_s3 + $0x18] sm:$0xff] %v185_v61  }

// kernel: nlayer_discriminator_forward.9
= control target key start
LH: loop header
LB: loop body
LE: loop exit
PB: predicated region body
PF: predicated region fallthrough
CT: control target
= control target key end

     0   :  { %v438_v12 = vmov 0.0   ;;  %s530_s1 = inlined_call_operand.vmem [shape: bf16[128,128], index: 1, kind: input, shape index: {}]   ;;  %s531_s0 = inlined_call_operand.vmem [shape: bf16[64,128], index: 0, kind: input, shape index: {}]   ;;  %s532_s3 = inlined_call_operand.vmem [shape: f32[1,128], index: 3, kind: output, shape index: {1}]   ;;  %s533_s4 = inlined_call_operand.vmem [shape: f32[1,128], index: 4, kind: output, shape index: {2}]   ;;  %s534_s2 = inlined_call_operand.vmem [shape: bf16[64,128], index: 2, kind: output, shape index: {0}]  }
   0x1   :  { %v426_v0 = vld [vmem:[%s530_s1] sm:$0xff]   ;;  %v427_v1 = vld [vmem:[%s530_s1 + $0x8] sm:$0xff]   ;;  %v428_v2 = vld [vmem:[%s530_s1 + $0x10] sm:$0xff]   ;;  %21 = vst [vmem:[%s532_s3] sm:$0x1] %v438_v12 }
   0x2   :  { %385 = vmatprep.subr.bf16.mxu0 %v426_v0  ;;  %409 = vmatprep.subr.bf16.mxu1 %v426_v0  ;;  %v429_v3 = vld [vmem:[%s530_s1 + $0x18] sm:$0xff]   ;;  %v434_v4 = vld [vmem:[%s531_s0] sm:$0xff]   ;;  %v436_v5 = vld [vmem:[%s531_s0 + $0x10] sm:$0xff]   ;;  %22 = vst [vmem:[%s533_s4] sm:$0x1] %v438_v12 }
   0x3   :  { %386 = vmatpush3.bf16.msra.mxu0 %v426_v0  ;;  %417 = vmatpush3.bf16.msra.mxu1 %v426_v0  ;;  %v430_v6 = vld [vmem:[%s530_s1 + $0x20] sm:$0xff]   ;;  %v431_v7 = vld [vmem:[%s530_s1 + $0x28] sm:$0xff]   ;;  %v432_v8 = vld [vmem:[%s530_s1 + $0x30] sm:$0xff]  }
   0x4   :  { %387 = vmatprep.subr.bf16.mxu0 %v427_v1  ;;  %410 = vmatprep.subr.bf16.mxu1 %v427_v1  ;;  %v433_v9 = vld [vmem:[%s530_s1 + $0x38] sm:$0xff]   ;;  %v435_v10 = vld [vmem:[%s531_s0 + $0x8] sm:$0xff]  }
   0x5   :  { %401 = vmatprep.mubr.bf16.mxu0 %v434_v4  ;;  %405 = vmatprep.mubr.bf16.mxu1 %v436_v5  ;;  %v437_v11 = vld [vmem:[%s531_s0 + $0x18] sm:$0xff]  }
   0x7   :  { %388 = vmatpush3.bf16.msra.mxu0 %v427_v1  ;;  %418 = vmatpush3.bf16.msra.mxu1 %v427_v1 }
   0x8   :  { %389 = vmatprep.subr.bf16.mxu0 %v428_v2  ;;  %411 = vmatprep.subr.bf16.mxu1 %v428_v2  ;;  %v270_v56 = vld [vmem:[%s532_s3] sm:$0x1] }
   0x9   :  { %v286_v59 = vld [vmem:[%s533_s4] sm:$0x1] }
   0xb   :  { %390 = vmatpush3.bf16.msra.mxu0 %v428_v2  ;;  %419 = vmatpush3.bf16.msra.mxu1 %v428_v2 }
   0xc   :  { %391 = vmatprep.subr.bf16.mxu0 %v429_v3  ;;  %412 = vmatprep.subr.bf16.mxu1 %v429_v3 }
   0xf   :  { %392 = vmatpush3.bf16.msra.mxu0 %v429_v3  ;;  %420 = vmatpush3.bf16.msra.mxu1 %v429_v3 }
  0x10   :  { %393 = vmatprep.subr.bf16.mxu0 %v430_v6  ;;  %413 = vmatprep.subr.bf16.mxu1 %v430_v6 }
  0x13   :  { %394 = vmatpush3.bf16.msra.mxu0 %v430_v6  ;;  %421 = vmatpush3.bf16.msra.mxu1 %v430_v6 }
  0x14   :  { %395 = vmatprep.subr.bf16.mxu0 %v431_v7  ;;  %414 = vmatprep.subr.bf16.mxu1 %v431_v7 }
  0x17   :  { %396 = vmatpush3.bf16.msra.mxu0 %v431_v7  ;;  %422 = vmatpush3.bf16.msra.mxu1 %v431_v7 }
  0x18   :  { %397 = vmatprep.subr.bf16.mxu0 %v432_v8  ;;  %415 = vmatprep.subr.bf16.mxu1 %v432_v8 }
  0x1b   :  { %398 = vmatpush3.bf16.msra.mxu0 %v432_v8  ;;  %423 = vmatpush3.bf16.msra.mxu1 %v432_v8 }
  0x1c   :  { %399 = vmatprep.subr.bf16.mxu0 %v433_v9  ;;  %416 = vmatprep.subr.bf16.mxu1 %v433_v9 }
  0x1f   :  { %400 = vmatpush3.bf16.msra.mxu0 %v433_v9  ;;  %424 = vmatpush3.bf16.msra.mxu1 %v433_v9 }
  0x22   :  { %402 = vmatmul.mubr.bf16.vlgmr.msra.gmra.mrb[0].mxu0 %v435_v10  ;;  %406 = vmatmul.mubr.bf16.vlgmr.msra.gmra.mrb[0].mxu1 %v437_v11 }
  0xf5   :  { %v403_v13 = vpop.f32.mrb[0].mxu0  ;;  %v407_v14 = vpop.f32.mrb[0].mxu1 }
  0xf6   :  { %v172_v15 = vpop.f32.mrb[1].mxu0  ;;  %v188_v16 = vpop.f32.mrb[1].mxu1  ;;  %v289_v28 = vmul.f32 %v403_v13, %v403_v13  ;;  %v293_v40 = vmul.f32 %v407_v14, %v407_v14 }
  0xf7   :  { %v404_v17 = vpop.f32.mrb[2].mxu0  ;;  %v408_v18 = vpop.f32.mrb[2].mxu1  ;;  %v287_v19 = vmul.f32 %v172_v15, %v172_v15  ;;  %v291_v34 = vmul.f32 %v188_v16, %v188_v16 }
  0xf8   :  { %v358_v20 = vpack.c.bf16 %v404_v17, %v403_v13  ;;  %v175_v21 = vpop.f32.mrb[3].mxu0  ;;  %v368_v22 = vpack.c.bf16 %v408_v18, %v407_v14  ;;  %v191_v23 = vpop.f32.mrb[3].mxu1  ;;  %v290_v31 = vmul.f32 %v404_v17, %v404_v17  ;;  %v294_v43 = vmul.f32 %v408_v18, %v408_v18 }
  0xf9   :  { %v353_v24 = vpack.c.bf16 %v175_v21, %v172_v15  ;;  %v271_v25 = vadd.f32 %v175_v21, %v172_v15  ;;  %v288_v26 = vmul.f32 %v175_v21, %v175_v21  ;;  %v363_v27 = vpack.c.bf16 %v191_v23, %v188_v16 }
  0xfa   :  { %370 = vst [vmem:[%s534_s2 + $0x8] sm:$0xff] %v358_v20   ;;  %372 = vst [vmem:[%s534_s2 + $0x18] sm:$0xff] %v368_v22   ;;  %v292_v39 = vmul.f32 %v191_v23, %v191_v23 }
  0xfb   :  { %354 = vst [vmem:[%s534_s2] sm:$0xff] %v353_v24   ;;  %v272_v29 = vadd.f32 %v403_v13, %v271_v25  ;;  %v295_v30 = vadd.f32 %v288_v26, %v287_v19  ;;  %371 = vst [vmem:[%s534_s2 + $0x10] sm:$0xff] %v363_v27  }
  0xfd   :  { %v296_v32 = vadd.f32 %v295_v30, %v289_v28  ;;  %v273_v33 = vadd.f32 %v404_v17, %v272_v29 }
  0xff   :  { %v274_v35 = vadd.f32 %v273_v33, %v188_v16  ;;  %v297_v36 = vadd.f32 %v296_v32, %v290_v31 }
 0x101   :  { %v298_v37 = vadd.f32 %v297_v36, %v291_v34  ;;  %v275_v38 = vadd.f32 %v274_v35, %v191_v23 }
 0x103   :  { %v276_v41 = vadd.f32 %v407_v14, %v275_v38  ;;  %v299_v42 = vadd.f32 %v298_v37, %v292_v39 }
 0x105   :  { %v277_v44 = vadd.f32 %v408_v18, %v276_v41  ;;  %v300_v45 = vadd.f32 %v299_v42, %v293_v40 }
 0x107   :  { %v278_v46 = vrot.slane %v277_v44, 4  ;;  %v301_v47 = vadd.f32 %v300_v45, %v294_v43 }
 0x109   :  { %v279_v48 = vadd.f32 %v278_v46, %v277_v44  ;;  %v302_v49 = vrot.slane %v301_v47, 4 }
 0x10b   :  { %v280_v50 = vrot.slane %v279_v48, 2  ;;  %v303_v51 = vadd.f32 %v302_v49, %v301_v47 }
 0x10d   :  { %v281_v52 = vadd.f32 %v280_v50, %v279_v48  ;;  %v304_v53 = vrot.slane %v303_v51, 2 }
 0x10f   :  { %v282_v54 = vrot.slane %v281_v52, 1  ;;  %v305_v55 = vadd.f32 %v304_v53, %v303_v51 }
 0x111   :  { %v283_v57 = vadd.f32 %v282_v54, %v281_v52  ;;  %v306_v58 = vrot.slane %v305_v55, 1 }
 0x113   :  { %v284_v60 = vadd.f32 %v283_v57, %v270_v56  ;;  %v307_v61 = vadd.f32 %v306_v58, %v305_v55 }
 0x115   :  { %285 = vst [vmem:[%s532_s3] sm:$0x1] %v284_v60  ;;  %v308_v62 = vadd.f32 %v307_v61, %v286_v59 }
 0x117   :  { %309 = vst [vmem:[%s533_s4] sm:$0x1] %v308_v62 }

// kernel: nlayer_discriminator_forward.12
= control target key start
LH: loop header
LB: loop body
LE: loop exit
PB: predicated region body
PF: predicated region fallthrough
CT: control target
= control target key end

     0   :  { %v32_v5 = vlaneseq  ;;  %s155_s1 = inlined_call_operand.vmem [shape: f32[1,128], index: 1, kind: input, shape index: {}]   ;;  %s156_s2 = inlined_call_operand.vmem [shape: f32[1,128], index: 2, kind: input, shape index: {}]   ;;  %s157_s0 = inlined_call_operand.vmem [shape: bf16[32,128], index: 0, kind: input, shape index: {}]   ;;  %s158_s3 = inlined_call_operand.vmem [shape: bf16[32,128], index: 3, kind: output, shape index: {}]  }
   0x1   :  { %v14_v0 = vld [vmem:[%s155_s1] sm:$0x1]  ;;  %v113_v12 = vld [vmem:[%s157_s0 + $0x8] sm:$0xff]  }
   0x2   :  { %v16_v1 = vld [vmem:[%s156_s2] sm:$0x1]  ;;  %v15_v2 = vmul.f32 0.055555556, %v14_v0  ;;  %v33_v8 = vshrl.u32 %v32_v5, 7  ;;  %v101_v16 = vunpack.c.l.bf16 %v113_v12  ;;  %v102_v17 = vunpack.c.h.bf16 %v113_v12 }
   0x3   :  { %v17_v3 = vmul.f32 0.055555556, %v16_v1  ;;  %v96_v10 = vld [vmem:[%s157_s0] sm:$0xff]  }
   0x4   :  { %v18_v4 = vmul.f32 %v15_v2, %v15_v2  ;;  %v34_v11 = vsub.s32 0, %v33_v8  ;;  %v97_v13 = vunpack.c.l.bf16 %v96_v10  ;;  %v98_v14 = vunpack.c.h.bf16 %v96_v10 }
   0x6   :  { %v19_v6 = vsub.f32 %v17_v3, %v18_v4  ;;  %v35_v15 = vrot.slane %v15_v2, %v34_v11 }
   0x8   :  { %v20_v7 = vmax.f32 %v19_v6, 0.0  ;;  %v37_v18 = vsub.f32 %v97_v13, %v35_v15  ;;  %v38_v19 = vsub.f32 %v98_v14, %v35_v15  ;;  %v39_v20 = vsub.f32 %v101_v16, %v35_v15 }
   0x9   :  { %v40_v21 = vsub.f32 %v102_v17, %v35_v15 }
   0xa   :  { %v21_v9 = vadd.f32 1e-05, %v20_v7 }
   0xc   :  { %115 = vrsqrt.f32 %v21_v9 }
  0x16   :  { %v116_v22 = vpop.eup %115 }
  0x17   :  { %v45_v23 = vrot.slane %v116_v22, %v34_v11 }
  0x19   :  { %v47_v24 = vmul.f32 %v45_v23, %v37_v18  ;;  %v48_v25 = vmul.f32 %v45_v23, %v38_v19  ;;  %v49_v26 = vmul.f32 %v45_v23, %v39_v20  ;;  %v50_v27 = vmul.f32 %v45_v23, %v40_v21 }
  0x1b   :  { %vm51_vm0 = vcmp.ge.f32.partialorder %v47_v24, 0.0  ;;  %vm52_vm1 = vcmp.ge.f32.partialorder %v48_v25, 0.0  ;;  %v55_v28 = vmul.f32 0.2, %v47_v24  ;;  %v56_v29 = vmul.f32 0.2, %v48_v25 }
  0x1c   :  { %vm53_vm2 = vcmp.ge.f32.partialorder %v49_v26, 0.0  ;;  %vm54_vm3 = vcmp.ge.f32.partialorder %v50_v27, 0.0  ;;  %v57_v30 = vmul.f32 0.2, %v49_v26  ;;  %v58_v31 = vmul.f32 0.2, %v50_v27 }
  0x1d   :  { %v59_v32 = vsel %vm51_vm0, %v47_v24, %v55_v28  ;;  %v60_v33 = vsel %vm52_vm1, %v48_v25, %v56_v29 }
  0x1e   :  { %v106_v34 = vpack.c.bf16 %v60_v33, %v59_v32  ;;  %v61_v35 = vsel %vm53_vm2, %v49_v26, %v57_v30  ;;  %v62_v36 = vsel %vm54_vm3, %v50_v27, %v58_v31 }
  0x1f   :  { %v111_v37 = vpack.c.bf16 %v62_v36, %v61_v35 }
  0x20   :  { %107 = vst [vmem:[%s158_s3] sm:$0xff] %v106_v34  }
  0x21   :  { %114 = vst [vmem:[%s158_s3 + $0x8] sm:$0xff] %v111_v37  }

// kernel: nlayer_discriminator_forward.11
= control target key start
LH: loop header
LB: loop body
LE: loop exit
PB: predicated region body
PF: predicated region fallthrough
CT: control target
= control target key end

     0   :  { %v416_v20 = vmov 0.0   ;;  %s526_s1 = inlined_call_operand.vmem [shape: bf16[256,128], index: 1, kind: input, shape index: {}]   ;;  %s527_s0 = inlined_call_operand.vmem [shape: bf16[32,256], index: 0, kind: input, shape index: {}]   ;;  %s528_s3 = inlined_call_operand.vmem [shape: f32[1,128], index: 3, kind: output, shape index: {1}]   ;;  %s529_s4 = inlined_call_operand.vmem [shape: f32[1,128], index: 4, kind: output, shape index: {2}]   ;;  %s530_s2 = inlined_call_operand.vmem [shape: bf16[32,128], index: 2, kind: output, shape index: {0}]  }
   0x1   :  { %v394_v0 = vld [vmem:[%s526_s1 + $0x40] sm:$0xff]   ;;  %v396_v2 = vld [vmem:[%s526_s1 + $0x48] sm:$0xff]   ;;  %v398_v4 = vld [vmem:[%s526_s1 + $0x50] sm:$0xff]   ;;  %21 = vst [vmem:[%s528_s3] sm:$0x1] %v416_v20 }
   0x2   :  { %v395_v1 = vld [vmem:[%s526_s1] sm:$0xff]   ;;  %349 = vmatprep.subr.bf16.mxu0 %v394_v0  ;;  %377 = vmatprep.subr.bf16.mxu1 %v394_v0  ;;  %v397_v3 = vld [vmem:[%s526_s1 + $0x8] sm:$0xff]   ;;  %v399_v5 = vld [vmem:[%s526_s1 + $0x10] sm:$0xff]   ;;  %22 = vst [vmem:[%s529_s4] sm:$0x1] %v416_v20 }
   0x3   :  { %350 = vmatpush3.bf16.msra.mxu0 %v395_v1  ;;  %385 = vmatpush3.bf16.msra.mxu1 %v395_v1  ;;  %v400_v6 = vld [vmem:[%s526_s1 + $0x58] sm:$0xff]   ;;  %v402_v8 = vld [vmem:[%s526_s1 + $0x60] sm:$0xff]   ;;  %v404_v10 = vld [vmem:[%s526_s1 + $0x68] sm:$0xff]  }
   0x4   :  { %351 = vmatprep.subr.bf16.mxu0 %v396_v2  ;;  %378 = vmatprep.subr.bf16.mxu1 %v396_v2  ;;  %v401_v7 = vld [vmem:[%s526_s1 + $0x18] sm:$0xff]   ;;  %v403_v9 = vld [vmem:[%s526_s1 + $0x20] sm:$0xff]   ;;  %v405_v13 = vld [vmem:[%s526_s1 + $0x28] sm:$0xff]  }
   0x5   :  { %v412_v11 = vld [vmem:[%s527_s0 + $0x4] ss:$8 sps:$4 sm:$0xff]   ;;  %v415_v12 = vld [vmem:[%s527_s0 + $0x14] ss:$8 sps:$4 sm:$0xff]   ;;  %v410_v18 = vld [vmem:[%s527_s0] ss:$8 sps:$4 sm:$0xff]  }
   0x6   :  { %v406_v14 = vld [vmem:[%s526_s1 + $0x70] sm:$0xff]   ;;  %218 = vmatprep.mubr.bf16.mxu0 %v412_v11  ;;  %226 = vmatprep.mubr.bf16.mxu1 %v415_v12  ;;  %v408_v16 = vld [vmem:[%s526_s1 + $0x78] sm:$0xff]  }
   0x7   :  { %352 = vmatpush3.bf16.msra.mxu0 %v397_v3  ;;  %386 = vmatpush3.bf16.msra.mxu1 %v397_v3  ;;  %v407_v15 = vld [vmem:[%s526_s1 + $0x30] sm:$0xff]   ;;  %v409_v17 = vld [vmem:[%s526_s1 + $0x38] sm:$0xff]  }
   0x8   :  { %353 = vmatprep.subr.bf16.mxu0 %v398_v4  ;;  %379 = vmatprep.subr.bf16.mxu1 %v398_v4  ;;  %v413_v19 = vld [vmem:[%s527_s0 + $0x10] ss:$8 sps:$4 sm:$0xff]   ;;  %v270_v54 = vld [vmem:[%s528_s3] sm:$0x1] }
   0x9   :  { %v282_v57 = vld [vmem:[%s529_s4] sm:$0x1] }
   0xb   :  { %354 = vmatpush3.bf16.msra.mxu0 %v399_v5  ;;  %387 = vmatpush3.bf16.msra.mxu1 %v399_v5 }
   0xc   :  { %355 = vmatprep.subr.bf16.mxu0 %v400_v6  ;;  %380 = vmatprep.subr.bf16.mxu1 %v400_v6 }
   0xf   :  { %356 = vmatpush3.bf16.msra.mxu0 %v401_v7  ;;  %388 = vmatpush3.bf16.msra.mxu1 %v401_v7 }
  0x10   :  { %357 = vmatprep.subr.bf16.mxu0 %v402_v8  ;;  %381 = vmatprep.subr.bf16.mxu1 %v402_v8 }
  0x13   :  { %358 = vmatpush3.bf16.msra.mxu0 %v403_v9  ;;  %389 = vmatpush3.bf16.msra.mxu1 %v403_v9 }
  0x14   :  { %359 = vmatprep.subr.bf16.mxu0 %v404_v10  ;;  %382 = vmatprep.subr.bf16.mxu1 %v404_v10 }
  0x17   :  { %360 = vmatpush3.bf16.msra.mxu0 %v405_v13  ;;  %390 = vmatpush3.bf16.msra.mxu1 %v405_v13 }
  0x18   :  { %361 = vmatprep.subr.bf16.mxu0 %v406_v14  ;;  %383 = vmatprep.subr.bf16.mxu1 %v406_v14 }
  0x1b   :  { %362 = vmatpush3.bf16.msra.mxu0 %v407_v15  ;;  %391 = vmatpush3.bf16.msra.mxu1 %v407_v15 }
  0x1c   :  { %363 = vmatprep.subr.bf16.mxu0 %v408_v16  ;;  %384 = vmatprep.subr.bf16.mxu1 %v408_v16 }
  0x1f   :  { %364 = vmatpush3.bf16.msra.mxu0 %v409_v17  ;;  %392 = vmatpush3.bf16.msra.mxu1 %v409_v17 }
  0x22   :  { %219 = vmatmul.mubr.bf16.vlgmr.msra.gmra.mrb[0].mxu0 %v410_v18  ;;  %227 = vmatmul.mubr.bf16.vlgmr.msra.gmra.mrb[0].mxu1 %v413_v19 }
  0xf5   :  { %v365_v21 = vpop.f32.mrb[0].mxu0  ;;  %v371_v22 = vpop.f32.mrb[0].mxu1 }
  0xf6   :  { %v366_v23 = vpop.f32.mrb[1].mxu0  ;;  %v372_v24 = vpop.f32.mrb[1].mxu1 }
  0xf7   :  { %v367_v25 = vadd.f32 %v366_v23, %v365_v21  ;;  %v368_v26 = vpop.f32.mrb[2].mxu0  ;;  %v373_v27 = vadd.f32 %v372_v24, %v371_v22  ;;  %v374_v28 = vpop.f32.mrb[2].mxu1 }
  0xf8   :  { %v369_v29 = vpop.f32.mrb[3].mxu0  ;;  %v375_v30 = vpop.f32.mrb[3].mxu1 }
  0xf9   :  { %v370_v31 = vadd.f32 %v369_v29, %v368_v26  ;;  %v376_v32 = vadd.f32 %v375_v30, %v374_v28  ;;  %v283_v33 = vmul.f32 %v367_v25, %v367_v25  ;;  %v285_v34 = vmul.f32 %v373_v27, %v373_v27 }
  0xfb   :  { %v341_v35 = vpack.c.bf16 %v370_v31, %v367_v25  ;;  %v271_v36 = vadd.f32 %v370_v31, %v367_v25  ;;  %v284_v37 = vmul.f32 %v370_v31, %v370_v31  ;;  %v346_v38 = vpack.c.bf16 %v376_v32, %v373_v27 }
  0xfc   :  { %v286_v42 = vmul.f32 %v376_v32, %v376_v32 }
  0xfd   :  { %342 = vst [vmem:[%s530_s2] sm:$0xff] %v341_v35   ;;  %v287_v39 = vadd.f32 %v284_v37, %v283_v33  ;;  %348 = vst [vmem:[%s530_s2 + $0x8] sm:$0xff] %v346_v38   ;;  %v272_v40 = vadd.f32 %v373_v27, %v271_v36 }
  0xff   :  { %v273_v41 = vadd.f32 %v376_v32, %v272_v40  ;;  %v288_v43 = vadd.f32 %v287_v39, %v285_v34 }
 0x101   :  { %v274_v44 = vrot.slane %v273_v41, 4  ;;  %v289_v45 = vadd.f32 %v288_v43, %v286_v42 }
 0x103   :  { %v275_v46 = vadd.f32 %v274_v44, %v273_v41  ;;  %v290_v47 = vrot.slane %v289_v45, 4 }
 0x105   :  { %v276_v48 = vrot.slane %v275_v46, 2  ;;  %v291_v49 = vadd.f32 %v290_v47, %v289_v45 }
 0x107   :  { %v277_v50 = vadd.f32 %v276_v48, %v275_v46  ;;  %v292_v51 = vrot.slane %v291_v49, 2 }
 0x109   :  { %v278_v52 = vrot.slane %v277_v50, 1  ;;  %v293_v53 = vadd.f32 %v292_v51, %v291_v49 }
 0x10b   :  { %v279_v55 = vadd.f32 %v278_v52, %v277_v50  ;;  %v294_v56 = vrot.slane %v293_v53, 1 }
 0x10d   :  { %v280_v58 = vadd.f32 %v279_v55, %v270_v54  ;;  %v295_v59 = vadd.f32 %v294_v56, %v293_v53 }
 0x10f   :  { %281 = vst [vmem:[%s528_s3] sm:$0x1] %v280_v58  ;;  %v296_v60 = vadd.f32 %v295_v59, %v282_v57 }
 0x111   :  { %297 = vst [vmem:[%s529_s4] sm:$0x1] %v296_v60 }

// kernel: nlayer_discriminator_forward.14
= control target key start
LH: loop header
LB: loop body
LE: loop exit
PB: predicated region body
PF: predicated region fallthrough
CT: control target
= control target key end

     0   :  { %v32_v5 = vlaneseq  ;;  %s155_s1 = inlined_call_operand.vmem [shape: f32[1,128], index: 1, kind: input, shape index: {}]   ;;  %s156_s2 = inlined_call_operand.vmem [shape: f32[1,128], index: 2, kind: input, shape index: {}]   ;;  %s157_s0 = inlined_call_operand.vmem [shape: bf16[32,128], index: 0, kind: input, shape index: {}]   ;;  %s158_s3 = inlined_call_operand.vmem [shape: bf16[32,128], index: 3, kind: output, shape index: {}]  }
   0x1   :  { %v14_v0 = vld [vmem:[%s155_s1] sm:$0x1]  ;;  %v113_v12 = vld [vmem:[%s157_s0 + $0x8] sm:$0xff]  }
   0x2   :  { %v16_v1 = vld [vmem:[%s156_s2] sm:$0x1]  ;;  %v15_v2 = vmul.f32 0.03125, %v14_v0  ;;  %v33_v8 = vshrl.u32 %v32_v5, 7  ;;  %v101_v16 = vunpack.c.l.bf16 %v113_v12  ;;  %v102_v17 = vunpack.c.h.bf16 %v113_v12 }
   0x3   :  { %v17_v3 = vmul.f32 0.03125, %v16_v1  ;;  %v96_v10 = vld [vmem:[%s157_s0] sm:$0xff]  }
   0x4   :  { %v18_v4 = vmul.f32 %v15_v2, %v15_v2  ;;  %v34_v11 = vsub.s32 0, %v33_v8  ;;  %v97_v13 = vunpack.c.l.bf16 %v96_v10  ;;  %v98_v14 = vunpack.c.h.bf16 %v96_v10 }
   0x6   :  { %v19_v6 = vsub.f32 %v17_v3, %v18_v4  ;;  %v35_v15 = vrot.slane %v15_v2, %v34_v11 }
   0x8   :  { %v20_v7 = vmax.f32 %v19_v6, 0.0  ;;  %v37_v18 = vsub.f32 %v97_v13, %v35_v15  ;;  %v38_v19 = vsub.f32 %v98_v14, %v35_v15  ;;  %v39_v20 = vsub.f32 %v101_v16, %v35_v15 }
   0x9   :  { %v40_v21 = vsub.f32 %v102_v17, %v35_v15 }
   0xa   :  { %v21_v9 = vadd.f32 1e-05, %v20_v7 }
   0xc   :  { %115 = vrsqrt.f32 %v21_v9 }
  0x16   :  { %v116_v22 = vpop.eup %115 }
  0x17   :  { %v45_v23 = vrot.slane %v116_v22, %v34_v11 }
  0x19   :  { %v47_v24 = vmul.f32 %v45_v23, %v37_v18  ;;  %v48_v25 = vmul.f32 %v45_v23, %v38_v19  ;;  %v49_v26 = vmul.f32 %v45_v23, %v39_v20  ;;  %v50_v27 = vmul.f32 %v45_v23, %v40_v21 }
  0x1b   :  { %vm51_vm0 = vcmp.ge.f32.partialorder %v47_v24, 0.0  ;;  %vm52_vm1 = vcmp.ge.f32.partialorder %v48_v25, 0.0  ;;  %v55_v28 = vmul.f32 0.2, %v47_v24  ;;  %v56_v29 = vmul.f32 0.2, %v48_v25 }
  0x1c   :  { %vm53_vm2 = vcmp.ge.f32.partialorder %v49_v26, 0.0  ;;  %vm54_vm3 = vcmp.ge.f32.partialorder %v50_v27, 0.0  ;;  %v57_v30 = vmul.f32 0.2, %v49_v26  ;;  %v58_v31 = vmul.f32 0.2, %v50_v27 }
  0x1d   :  { %v59_v32 = vsel %vm51_vm0, %v47_v24, %v55_v28  ;;  %v60_v33 = vsel %vm52_vm1, %v48_v25, %v56_v29 }
  0x1e   :  { %v106_v34 = vpack.c.bf16 %v60_v33, %v59_v32  ;;  %v61_v35 = vsel %vm53_vm2, %v49_v26, %v57_v30  ;;  %v62_v36 = vsel %vm54_vm3, %v50_v27, %v58_v31 }
  0x1f   :  { %v111_v37 = vpack.c.bf16 %v62_v36, %v61_v35 }
  0x20   :  { %107 = vst [vmem:[%s158_s3] sm:$0xff] %v106_v34  }
  0x21   :  { %114 = vst [vmem:[%s158_s3 + $0x8] sm:$0xff] %v111_v37  }

// kernel: nlayer_discriminator_forward.13
= control target key start
LH: loop header
LB: loop body
LE: loop exit
PB: predicated region body
PF: predicated region fallthrough
CT: control target
= control target key end

     0   :  { %v671_v40 = vmov 0.0   ;;  %s841_s1 = inlined_call_operand.vmem [shape: bf16[512,128], index: 1, kind: input, shape index: {}]   ;;  %s842_s0 = inlined_call_operand.vmem [shape: bf16[32,512], index: 0, kind: input, shape index: {}]   ;;  %s843_s3 = inlined_call_operand.vmem [shape: f32[1,128], index: 3, kind: output, shape index: {1}]   ;;  %s844_s4 = inlined_call_operand.vmem [shape: f32[1,128], index: 4, kind: output, shape index: {2}]   ;;  %s845_s2 = inlined_call_operand.vmem [shape: bf16[32,128], index: 2, kind: output, shape index: {0}]  }
   0x1   :  { %v627_v0 = vld [vmem:[%s841_s1 + $0x40] sm:$0xff]   ;;  %v631_v4 = vld [vmem:[%s841_s1 + $0x48] sm:$0xff]   ;;  %v635_v8 = vld [vmem:[%s841_s1 + $0x50] sm:$0xff]   ;;  %21 = vst [vmem:[%s843_s3] sm:$0x1] %v671_v40 }
   0x2   :  { %v628_v1 = vld [vmem:[%s841_s1 + $0xc0] sm:$0xff]   ;;  %570 = vmatprep.subr.bf16.mxu0 %v627_v0  ;;  %v632_v5 = vld [vmem:[%s841_s1 + $0xc8] sm:$0xff]   ;;  %v636_v9 = vld [vmem:[%s841_s1 + $0xd0] sm:$0xff]   ;;  %22 = vst [vmem:[%s844_s4] sm:$0x1] %v671_v40 }
   0x3   :  { %v629_v2 = vld [vmem:[%s841_s1] sm:$0xff]   ;;  %598 = vmatprep.subr.bf16.mxu1 %v628_v1  ;;  %v633_v6 = vld [vmem:[%s841_s1 + $0x8] sm:$0xff]   ;;  %v637_v10 = vld [vmem:[%s841_s1 + $0x10] sm:$0xff]  }
   0x4   :  { %v630_v3 = vld [vmem:[%s841_s1 + $0x80] sm:$0xff]   ;;  %571 = vmatpush3.bf16.msra.mxu0 %v629_v2  ;;  %v634_v7 = vld [vmem:[%s841_s1 + $0x88] sm:$0xff]   ;;  %v638_v11 = vld [vmem:[%s841_s1 + $0x90] sm:$0xff]  }
   0x5   :  { %599 = vmatpush3.bf16.msra.mxu1 %v630_v3  ;;  %572 = vmatprep.subr.bf16.mxu0 %v631_v4  ;;  %v639_v12 = vld [vmem:[%s841_s1 + $0x58] sm:$0xff]   ;;  %v643_v16 = vld [vmem:[%s841_s1 + $0x60] sm:$0xff]   ;;  %v647_v20 = vld [vmem:[%s841_s1 + $0x68] sm:$0xff]  }
   0x6   :  { %600 = vmatprep.subr.bf16.mxu1 %v632_v5  ;;  %v640_v13 = vld [vmem:[%s841_s1 + $0xd8] sm:$0xff]   ;;  %v644_v17 = vld [vmem:[%s841_s1 + $0xe0] sm:$0xff]   ;;  %v648_v21 = vld [vmem:[%s841_s1 + $0xe8] sm:$0xff]  }
   0x7   :  { %v641_v14 = vld [vmem:[%s841_s1 + $0x18] sm:$0xff]   ;;  %v645_v18 = vld [vmem:[%s841_s1 + $0x20] sm:$0xff]   ;;  %v649_v22 = vld [vmem:[%s841_s1 + $0x28] sm:$0xff]  }
   0x8   :  { %573 = vmatpush3.bf16.msra.mxu0 %v633_v6  ;;  %v642_v15 = vld [vmem:[%s841_s1 + $0x98] sm:$0xff]   ;;  %v646_v19 = vld [vmem:[%s841_s1 + $0xa0] sm:$0xff]   ;;  %v650_v23 = vld [vmem:[%s841_s1 + $0xa8] sm:$0xff]  }
   0x9   :  { %601 = vmatpush3.bf16.msra.mxu1 %v634_v7  ;;  %574 = vmatprep.subr.bf16.mxu0 %v635_v8  ;;  %v651_v24 = vld [vmem:[%s841_s1 + $0x70] sm:$0xff]   ;;  %v655_v28 = vld [vmem:[%s841_s1 + $0x78] sm:$0xff]  }
   0xa   :  { %602 = vmatprep.subr.bf16.mxu1 %v636_v9  ;;  %v652_v25 = vld [vmem:[%s841_s1 + $0xf0] sm:$0xff]   ;;  %v656_v29 = vld [vmem:[%s841_s1 + $0xf8] sm:$0xff]  }
   0xb   :  { %v653_v26 = vld [vmem:[%s841_s1 + $0x30] sm:$0xff]   ;;  %v657_v30 = vld [vmem:[%s841_s1 + $0x38] sm:$0xff]  }
   0xc   :  { %575 = vmatpush3.bf16.msra.mxu0 %v637_v10  ;;  %v654_v27 = vld [vmem:[%s841_s1 + $0xb0] sm:$0xff]   ;;  %v658_v31 = vld [vmem:[%s841_s1 + $0xb8] sm:$0xff]  }
   0xd   :  { %603 = vmatpush3.bf16.msra.mxu1 %v638_v11  ;;  %576 = vmatprep.subr.bf16.mxu0 %v639_v12  ;;  %v659_v32 = vld [vmem:[%s842_s0] ss:$16 sps:$4 sm:$0xff]   ;;  %v661_v33 = vld [vmem:[%s842_s0 + $0x4] ss:$16 sps:$4 sm:$0xff]   ;;  %v662_v34 = vld [vmem:[%s842_s0 + $0x8] ss:$16 sps:$4 sm:$0xff]  }
   0xe   :  { %604 = vmatprep.subr.bf16.mxu1 %v640_v13  ;;  %v664_v35 = vld [vmem:[%s842_s0 + $0xc] ss:$16 sps:$4 sm:$0xff]   ;;  %370 = vmatprep.mubr.bf16.mxu0 %v661_v33  ;;  %v665_v36 = vld [vmem:[%s842_s0 + $0x24] ss:$16 sps:$4 sm:$0xff]   ;;  %v669_v38 = vld [vmem:[%s842_s0 + $0x20] ss:$16 sps:$4 sm:$0xff]  }
   0xf   :  { %419 = vmatprep.mubr.bf16.mxu1 %v664_v35  ;;  %v667_v37 = vld [vmem:[%s842_s0 + $0x2c] ss:$16 sps:$4 sm:$0xff]   ;;  %v670_v39 = vld [vmem:[%s842_s0 + $0x28] ss:$16 sps:$4 sm:$0xff]  }
  0x10   :  { %577 = vmatpush3.bf16.msra.mxu0 %v641_v14 }
  0x11   :  { %605 = vmatpush3.bf16.msra.mxu1 %v642_v15  ;;  %578 = vmatprep.subr.bf16.mxu0 %v643_v16 }
  0x12   :  { %606 = vmatprep.subr.bf16.mxu1 %v644_v17 }
  0x14   :  { %579 = vmatpush3.bf16.msra.mxu0 %v645_v18 }
  0x15   :  { %607 = vmatpush3.bf16.msra.mxu1 %v646_v19  ;;  %580 = vmatprep.subr.bf16.mxu0 %v647_v20 }
  0x16   :  { %608 = vmatprep.subr.bf16.mxu1 %v648_v21 }
  0x18   :  { %581 = vmatpush3.bf16.msra.mxu0 %v649_v22 }
  0x19   :  { %609 = vmatpush3.bf16.msra.mxu1 %v650_v23  ;;  %582 = vmatprep.subr.bf16.mxu0 %v651_v24 }
  0x1a   :  { %610 = vmatprep.subr.bf16.mxu1 %v652_v25 }
  0x1c   :  { %583 = vmatpush3.bf16.msra.mxu0 %v653_v26  ;;  %v471_v26 = vld [vmem:[%s843_s3] sm:$0x1] }
  0x1d   :  { %611 = vmatpush3.bf16.msra.mxu1 %v654_v27  ;;  %584 = vmatprep.subr.bf16.mxu0 %v655_v28 }
  0x1e   :  { %612 = vmatprep.subr.bf16.mxu1 %v656_v29  ;;  %v483_v29 = vld [vmem:[%s844_s4] sm:$0x1] }
  0x20   :  { %585 = vmatpush3.bf16.msra.mxu0 %v657_v30 }
  0x21   :  { %613 = vmatpush3.bf16.msra.mxu1 %v658_v31 }
  0x23   :  { %371 = vmatmul.mubr.bf16.vlgmr.msra.gmra.mrb[0].mxu0 %v659_v32 }
  0x24   :  { %420 = vmatmul.mubr.bf16.vlgmr.msra.gmra.mrb[0].mxu1 %v662_v34  ;;  %378 = vmatprep.mubr.bf16.mxu0 %v665_v36 }
  0x25   :  { %427 = vmatprep.mubr.bf16.mxu1 %v667_v37 }
  0x2b   :  { %379 = vmatmul.mubr.bf16.gmra.mrb[4].mxu0 %v669_v38 }
  0x2c   :  { %428 = vmatmul.mubr.bf16.gmra.mrb[4].mxu1 %v670_v39 }
  0xf6   :  { %v586_v41 = vpop.f32.mrb[0].mxu0 }
  0xf7   :  { %v614_v42 = vpop.f32.mrb[0].mxu1  ;;  %v587_v43 = vpop.f32.mrb[1].mxu0 }
  0xf8   :  { %v588_v44 = vadd.f32 %v587_v43, %v586_v41  ;;  %v615_v45 = vpop.f32.mrb[1].mxu1  ;;  %v589_v46 = vpop.f32.mrb[2].mxu0 }
  0xf9   :  { %v616_v47 = vadd.f32 %v615_v45, %v614_v42  ;;  %v617_v48 = vpop.f32.mrb[2].mxu1  ;;  %v590_v49 = vpop.f32.mrb[3].mxu0 }
  0xfa   :  { %v591_v50 = vadd.f32 %v590_v49, %v589_v46  ;;  %v618_v51 = vpop.f32.mrb[3].mxu1 }
  0xfb   :  { %v422_v52 = vadd.f32 %v616_v47, %v588_v44  ;;  %v619_v53 = vadd.f32 %v618_v51, %v617_v48 }
  0xfd   :  { %v425_v54 = vadd.f32 %v619_v53, %v591_v50  ;;  %v484_v56 = vmul.f32 %v422_v52, %v422_v52 }
  0xfe   :  { %v592_v55 = vpop.f32.mrb[4].mxu0 }
  0xff   :  { %v562_v57 = vpack.c.bf16 %v425_v54, %v422_v52  ;;  %v472_v58 = vadd.f32 %v425_v54, %v422_v52  ;;  %v485_v59 = vmul.f32 %v425_v54, %v425_v54  ;;  %v620_v60 = vpop.f32.mrb[4].mxu1  ;;  %v593_v61 = vpop.f32.mrb[5].mxu0 }
 0x100   :  { %v594_v62 = vadd.f32 %v593_v61, %v592_v55  ;;  %v621_v63 = vpop.f32.mrb[5].mxu1  ;;  %v595_v0 = vpop.f32.mrb[6].mxu0 }
 0x101   :  { %563 = vst [vmem:[%s845_s2] sm:$0xff] %v562_v57   ;;  %v488_v1 = vadd.f32 %v485_v59, %v484_v56  ;;  %v622_v2 = vadd.f32 %v621_v63, %v620_v60  ;;  %v623_v3 = vpop.f32.mrb[6].mxu1  ;;  %v596_v4 = vpop.f32.mrb[7].mxu0 }
 0x102   :  { %v597_v5 = vadd.f32 %v596_v4, %v595_v0  ;;  %v624_v6 = vpop.f32.mrb[7].mxu1 }
 0x103   :  { %v430_v7 = vadd.f32 %v622_v2, %v594_v62  ;;  %v625_v8 = vadd.f32 %v624_v6, %v623_v3 }
 0x105   :  { %v473_v9 = vadd.f32 %v472_v58, %v430_v7  ;;  %v486_v10 = vmul.f32 %v430_v7, %v430_v7  ;;  %v433_v11 = vadd.f32 %v625_v8, %v597_v5 }
 0x107   :  { %v489_v12 = vadd.f32 %v488_v1, %v486_v10  ;;  %v567_v13 = vpack.c.bf16 %v433_v11, %v430_v7  ;;  %v474_v14 = vadd.f32 %v473_v9, %v433_v11  ;;  %v487_v15 = vmul.f32 %v433_v11, %v433_v11 }
 0x109   :  { %569 = vst [vmem:[%s845_s2 + $0x8] sm:$0xff] %v567_v13   ;;  %v475_v16 = vrot.slane %v474_v14, 4  ;;  %v490_v17 = vadd.f32 %v489_v12, %v487_v15 }
 0x10b   :  { %v476_v18 = vadd.f32 %v475_v16, %v474_v14  ;;  %v491_v19 = vrot.slane %v490_v17, 4 }
 0x10d   :  { %v477_v20 = vrot.slane %v476_v18, 2  ;;  %v492_v21 = vadd.f32 %v491_v19, %v490_v17 }
 0x10f   :  { %v478_v22 = vadd.f32 %v477_v20, %v476_v18  ;;  %v493_v23 = vrot.slane %v492_v21, 2 }
 0x111   :  { %v479_v24 = vrot.slane %v478_v22, 1  ;;  %v494_v25 = vadd.f32 %v493_v23, %v492_v21 }
 0x113   :  { %v480_v27 = vadd.f32 %v479_v24, %v478_v22  ;;  %v495_v28 = vrot.slane %v494_v25, 1 }
 0x115   :  { %v481_v30 = vadd.f32 %v480_v27, %v471_v26  ;;  %v496_v31 = vadd.f32 %v495_v28, %v494_v25 }
 0x117   :  { %482 = vst [vmem:[%s843_s3] sm:$0x1] %v481_v30  ;;  %v497_v32 = vadd.f32 %v496_v31, %v483_v29 }
 0x119   :  { %498 = vst [vmem:[%s844_s4] sm:$0x1] %v497_v32 }

// kernel: nlayer_discriminator_forward.15
= control target key start
LH: loop header
LB: loop body
LE: loop exit
PB: predicated region body
PF: predicated region fallthrough
CT: control target
= control target key end

     0   :  { %s1737_s1 = inlined_call_operand.vmem [shape: bf16[1024,128], index: 1, kind: input, shape index: {}]   ;;  %s1738_s0 = inlined_call_operand.vmem [shape: bf16[64,1024], index: 0, kind: input, shape index: {}]   ;;  %s1739_s2 = inlined_call_operand.vmem [shape: f32[1,128], index: 2, kind: input, shape index: {}]   ;;  %s1740_s3 = inlined_call_operand.vmem [shape: f32[64,128], index: 3, kind: output, shape index: {}]  }
   0x1   :  { %v1310_v0 = vld [vmem:[%s1737_s1 + $0x40] sm:$0xff]   ;;  %v1314_v4 = vld [vmem:[%s1737_s1 + $0x48] sm:$0xff]   ;;  %v1318_v8 = vld [vmem:[%s1737_s1 + $0x50] sm:$0xff]  }
   0x2   :  { %v1311_v1 = vld [vmem:[%s1737_s1 + $0xc0] sm:$0xff]   ;;  %1150 = vmatprep.subr.bf16.mxu0 %v1310_v0  ;;  %v1315_v5 = vld [vmem:[%s1737_s1 + $0xc8] sm:$0xff]   ;;  %v1319_v9 = vld [vmem:[%s1737_s1 + $0xd0] sm:$0xff]  }
   0x3   :  { %v1312_v2 = vld [vmem:[%s1737_s1] sm:$0xff]   ;;  %1190 = vmatprep.subr.bf16.mxu1 %v1311_v1  ;;  %v1316_v6 = vld [vmem:[%s1737_s1 + $0x8] sm:$0xff]   ;;  %v1320_v10 = vld [vmem:[%s1737_s1 + $0x10] sm:$0xff]  }
   0x4   :  { %v1313_v3 = vld [vmem:[%s1737_s1 + $0x80] sm:$0xff]   ;;  %1151 = vmatpush3.bf16.msra.mxu0 %v1312_v2  ;;  %v1317_v7 = vld [vmem:[%s1737_s1 + $0x88] sm:$0xff]   ;;  %v1321_v11 = vld [vmem:[%s1737_s1 + $0x90] sm:$0xff]  }
   0x5   :  { %1191 = vmatpush3.bf16.msra.mxu1 %v1313_v3  ;;  %1152 = vmatprep.subr.bf16.mxu0 %v1314_v4  ;;  %v1322_v12 = vld [vmem:[%s1737_s1 + $0x58] sm:$0xff]   ;;  %v1326_v16 = vld [vmem:[%s1737_s1 + $0x60] sm:$0xff]   ;;  %v1330_v20 = vld [vmem:[%s1737_s1 + $0x68] sm:$0xff]  }
   0x6   :  { %1192 = vmatprep.subr.bf16.mxu1 %v1315_v5  ;;  %v1323_v13 = vld [vmem:[%s1737_s1 + $0xd8] sm:$0xff]   ;;  %v1327_v17 = vld [vmem:[%s1737_s1 + $0xe0] sm:$0xff]   ;;  %v1331_v21 = vld [vmem:[%s1737_s1 + $0xe8] sm:$0xff]  }
   0x7   :  { %v1324_v14 = vld [vmem:[%s1737_s1 + $0x18] sm:$0xff]   ;;  %v1328_v18 = vld [vmem:[%s1737_s1 + $0x20] sm:$0xff]   ;;  %v1332_v22 = vld [vmem:[%s1737_s1 + $0x28] sm:$0xff]  }
   0x8   :  { %1153 = vmatpush3.bf16.msra.mxu0 %v1316_v6  ;;  %v1325_v15 = vld [vmem:[%s1737_s1 + $0x98] sm:$0xff]   ;;  %v1329_v19 = vld [vmem:[%s1737_s1 + $0xa0] sm:$0xff]   ;;  %v1333_v23 = vld [vmem:[%s1737_s1 + $0xa8] sm:$0xff]  }
   0x9   :  { %1193 = vmatpush3.bf16.msra.mxu1 %v1317_v7  ;;  %1154 = vmatprep.subr.bf16.mxu0 %v1318_v8  ;;  %v1334_v24 = vld [vmem:[%s1737_s1 + $0x70] sm:$0xff]   ;;  %v1338_v28 = vld [vmem:[%s1737_s1 + $0x78] sm:$0xff]   ;;  %v35_v32 = vld [vmem:[%s1738_s0] sm:$0xff] }
   0xa   :  { %1194 = vmatprep.subr.bf16.mxu1 %v1319_v9  ;;  %v1335_v25 = vld [vmem:[%s1737_s1 + $0xf0] sm:$0xff]   ;;  %v1339_v29 = vld [vmem:[%s1737_s1 + $0xf8] sm:$0xff]   ;;  %v39_v33 = vld [vmem:[%s1738_s0 + $0x20] sm:$0xff] }
   0xb   :  { %v1336_v26 = vld [vmem:[%s1737_s1 + $0x30] sm:$0xff]   ;;  %v1340_v30 = vld [vmem:[%s1737_s1 + $0x38] sm:$0xff]   ;;  %v36_v34 = vld [vmem:[%s1738_s0 + $0x8] sm:$0xff]  ;;  %v1053_v35 = vcombine.low %v35_v32, %v39_v33  ;;  %v1054_v36 = vcombine.high %v35_v32, %v39_v33 }
   0xc   :  { %1155 = vmatpush3.bf16.msra.mxu0 %v1320_v10  ;;  %v1337_v27 = vld [vmem:[%s1737_s1 + $0xb0] sm:$0xff]   ;;  %v1341_v31 = vld [vmem:[%s1737_s1 + $0xb8] sm:$0xff]   ;;  %v40_v37 = vld [vmem:[%s1738_s0 + $0x28] sm:$0xff] }
   0xd   :  { %1195 = vmatpush3.bf16.msra.mxu1 %v1321_v11  ;;  %1156 = vmatprep.subr.bf16.mxu0 %v1322_v12  ;;  %v1055_v38 = vcombine.low %v36_v34, %v40_v37  ;;  %v1056_v39 = vcombine.high %v36_v34, %v40_v37  ;;  %v1342_v40 = vld [vmem:[%s1737_s1 + $0x140] sm:$0xff]   ;;  %v1346_v44 = vld [vmem:[%s1737_s1 + $0x148] sm:$0xff]   ;;  %v1350_v56 = vld [vmem:[%s1737_s1 + $0x150] sm:$0xff]  }
   0xe   :  { %1196 = vmatprep.subr.bf16.mxu1 %v1323_v13  ;;  %771 = vmatprep.mubr.bf16.mxu0 %v1054_v36  ;;  %v1343_v41 = vld [vmem:[%s1737_s1 + $0x1c0] sm:$0xff]   ;;  %v1347_v45 = vld [vmem:[%s1737_s1 + $0x1c8] sm:$0xff]   ;;  %v1351_v57 = vld [vmem:[%s1737_s1 + $0x1d0] sm:$0xff]  }
   0xf   :  { %836 = vmatprep.mubr.bf16.mxu1 %v1056_v39  ;;  %v1344_v42 = vld [vmem:[%s1737_s1 + $0x100] sm:$0xff]   ;;  %v1348_v46 = vld [vmem:[%s1737_s1 + $0x108] sm:$0xff]   ;;  %v1352_v58 = vld [vmem:[%s1737_s1 + $0x110] sm:$0xff]  }
  0x10   :  { %1157 = vmatpush3.bf16.msra.mxu0 %v1324_v14  ;;  %v1345_v43 = vld [vmem:[%s1737_s1 + $0x180] sm:$0xff]   ;;  %v1349_v47 = vld [vmem:[%s1737_s1 + $0x188] sm:$0xff]   ;;  %v1353_v59 = vld [vmem:[%s1737_s1 + $0x190] sm:$0xff]  }
  0x11   :  { %1197 = vmatpush3.bf16.msra.mxu1 %v1325_v15  ;;  %1158 = vmatprep.subr.bf16.mxu0 %v1326_v16  ;;  %v43_v48 = vld [vmem:[%s1738_s0 + $0x40] sm:$0xff]  ;;  %v44_v51 = vld [vmem:[%s1738_s0 + $0x48] sm:$0xff]  ;;  %v1354_v60 = vld [vmem:[%s1737_s1 + $0x158] sm:$0xff]  }
  0x12   :  { %1198 = vmatprep.subr.bf16.mxu1 %v1327_v17  ;;  %v47_v49 = vld [vmem:[%s1738_s0 + $0x60] sm:$0xff]  ;;  %v48_v52 = vld [vmem:[%s1738_s0 + $0x68] sm:$0xff]  ;;  %v1355_v61 = vld [vmem:[%s1737_s1 + $0x1d8] sm:$0xff]  }
  0x13   :  { %v1062_v50 = vcombine.high %v43_v48, %v47_v49  ;;  %v1061_v53 = vcombine.low %v43_v48, %v47_v49  ;;  %v1064_v54 = vcombine.high %v44_v51, %v48_v52  ;;  %v1063_v55 = vcombine.low %v44_v51, %v48_v52  ;;  %v1356_v62 = vld [vmem:[%s1737_s1 + $0x118] sm:$0xff]   ;;  %v51_v0 = vld [vmem:[%s1738_s0 + $0x80] sm:$0xff]  ;;  %v52_v2 = vld [vmem:[%s1738_s0 + $0x88] sm:$0xff] }
  0x14   :  { %1159 = vmatpush3.bf16.msra.mxu0 %v1328_v18  ;;  %v1357_v63 = vld [vmem:[%s1737_s1 + $0x198] sm:$0xff]   ;;  %v55_v1 = vld [vmem:[%s1738_s0 + $0xa0] sm:$0xff]  ;;  %v56_v3 = vld [vmem:[%s1738_s0 + $0xa8] sm:$0xff] }
  0x15   :  { %1199 = vmatpush3.bf16.msra.mxu1 %v1329_v19  ;;  %1160 = vmatprep.subr.bf16.mxu0 %v1330_v20  ;;  %v1070_v4 = vcombine.high %v51_v0, %v55_v1  ;;  %v1072_v5 = vcombine.high %v52_v2, %v56_v3  ;;  %v1069_v6 = vcombine.low %v51_v0, %v55_v1  ;;  %v1358_v8 = vld [vmem:[%s1737_s1 + $0x160] sm:$0xff]   ;;  %v1362_v12 = vld [vmem:[%s1737_s1 + $0x168] sm:$0xff]   ;;  %v37_v32 = vld [vmem:[%s1738_s0 + $0x10] sm:$0xff] }
  0x16   :  { %1200 = vmatprep.subr.bf16.mxu1 %v1331_v21  ;;  %v1071_v7 = vcombine.low %v52_v2, %v56_v3  ;;  %v1359_v9 = vld [vmem:[%s1737_s1 + $0x1e0] sm:$0xff]   ;;  %v1363_v13 = vld [vmem:[%s1737_s1 + $0x1e8] sm:$0xff]   ;;  %v41_v33 = vld [vmem:[%s1738_s0 + $0x30] sm:$0xff] }
  0x17   :  { %v1360_v10 = vld [vmem:[%s1737_s1 + $0x120] sm:$0xff]   ;;  %v1364_v14 = vld [vmem:[%s1737_s1 + $0x128] sm:$0xff]   ;;  %v1057_v34 = vcombine.low %v37_v32, %v41_v33  ;;  %v38_v36 = vld [vmem:[%s1738_s0 + $0x18] sm:$0xff] }
  0x18   :  { %1161 = vmatpush3.bf16.msra.mxu0 %v1332_v22  ;;  %v1361_v11 = vld [vmem:[%s1737_s1 + $0x1a0] sm:$0xff]   ;;  %v1365_v15 = vld [vmem:[%s1737_s1 + $0x1a8] sm:$0xff]   ;;  %v42_v37 = vld [vmem:[%s1738_s0 + $0x38] sm:$0xff] }
  0x19   :  { %1201 = vmatpush3.bf16.msra.mxu1 %v1333_v23  ;;  %1162 = vmatprep.subr.bf16.mxu0 %v1334_v24  ;;  %v59_v16 = vld [vmem:[%s1738_s0 + $0xc0] sm:$0xff]  ;;  %v60_v18 = vld [vmem:[%s1738_s0 + $0xc8] sm:$0xff]  ;;  %v1366_v24 = vld [vmem:[%s1737_s1 + $0x170] sm:$0xff]   ;;  %v1059_v39 = vcombine.low %v38_v36, %v42_v37 }
  0x1a   :  { %1202 = vmatprep.subr.bf16.mxu1 %v1335_v25  ;;  %v63_v17 = vld [vmem:[%s1738_s0 + $0xe0] sm:$0xff]  ;;  %v64_v20 = vld [vmem:[%s1738_s0 + $0xe8] sm:$0xff]  ;;  %v1367_v25 = vld [vmem:[%s1737_s1 + $0x1f0] sm:$0xff]  }
  0x1b   :  { %v1078_v19 = vcombine.high %v59_v16, %v63_v17  ;;  %v1077_v21 = vcombine.low %v59_v16, %v63_v17  ;;  %v1080_v22 = vcombine.high %v60_v18, %v64_v20  ;;  %v1079_v23 = vcombine.low %v60_v18, %v64_v20  ;;  %v54_v48 = vld [vmem:[%s1738_s0 + $0x98] sm:$0xff] }
  0x1c   :  { %1163 = vmatpush3.bf16.msra.mxu0 %v1336_v26  ;;  %v1368_v26 = vld [vmem:[%s1737_s1 + $0x130] sm:$0xff]   ;;  %v58_v49 = vld [vmem:[%s1738_s0 + $0xb8] sm:$0xff] }
  0x1d   :  { %1203 = vmatpush3.bf16.msra.mxu1 %v1337_v27  ;;  %1164 = vmatprep.subr.bf16.mxu0 %v1338_v28  ;;  %v1369_v27 = vld [vmem:[%s1737_s1 + $0x1b0] sm:$0xff]   ;;  %v1370_v28 = vld [vmem:[%s1737_s1 + $0x178] sm:$0xff]  }
  0x1e   :  { %1204 = vmatprep.subr.bf16.mxu1 %v1339_v29  ;;  %v1371_v29 = vld [vmem:[%s1737_s1 + $0x1f8] sm:$0xff]  }
  0x20   :  { %1165 = vmatpush3.bf16.msra.mxu0 %v1340_v30  ;;  %v1372_v30 = vld [vmem:[%s1737_s1 + $0x138] sm:$0xff]  }
  0x21   :  { %1205 = vmatpush3.bf16.msra.mxu1 %v1341_v31  ;;  %1230 = vmatprep.subr.bf16.mxu0 %v1342_v40  ;;  %v1373_v31 = vld [vmem:[%s1737_s1 + $0x1b8] sm:$0xff]   ;;  %v1060_v40 = vcombine.high %v38_v36, %v42_v37 }
  0x22   :  { %1270 = vmatprep.subr.bf16.mxu1 %v1343_v41  ;;  %v49_v41 = vld [vmem:[%s1738_s0 + $0x70] sm:$0xff] }
  0x23   :  { %772 = vmatmul.mubr.bf16.vlgmr.msra.gmra.mrb[0].mxu0 %v1053_v35  ;;  %v1058_v35 = vcombine.high %v37_v32, %v41_v33 }
  0x24   :  { %837 = vmatmul.mubr.bf16.vlgmr.msra.gmra.mrb[0].mxu1 %v1055_v38  ;;  %1231 = vmatpush3.bf16.msra.mxu0 %v1344_v42  ;;  %v45_v38 = vld [vmem:[%s1738_s0 + $0x50] sm:$0xff]  ;;  %v46_v42 = vld [vmem:[%s1738_s0 + $0x58] sm:$0xff] }
  0x25   :  { %1271 = vmatpush3.bf16.msra.mxu1 %v1345_v43  ;;  %1232 = vmatprep.subr.bf16.mxu0 %v1346_v44  ;;  %v50_v43 = vld [vmem:[%s1738_s0 + $0x78] sm:$0xff]  ;;  %v1066_v44 = vcombine.high %v45_v38, %v49_v41 }
  0x26   :  { %1272 = vmatprep.subr.bf16.mxu1 %v1347_v45  ;;  %779 = vmatprep.mubr.bf16.mxu0 %v1062_v50  ;;  %v1068_v45 = vcombine.high %v46_v42, %v50_v43  ;;  %v1065_v50 = vcombine.low %v45_v38, %v49_v41  ;;  %v1067_v51 = vcombine.low %v46_v42, %v50_v43 }
  0x27   :  { %844 = vmatprep.mubr.bf16.mxu1 %v1064_v54  ;;  %v61_v54 = vld [vmem:[%s1738_s0 + $0xd0] sm:$0xff] }
  0x28   :  { %1233 = vmatpush3.bf16.msra.mxu0 %v1348_v46  ;;  %v53_v46 = vld [vmem:[%s1738_s0 + $0x90] sm:$0xff] }
  0x29   :  { %1273 = vmatpush3.bf16.msra.mxu1 %v1349_v47  ;;  %1234 = vmatprep.subr.bf16.mxu0 %v1350_v56  ;;  %v57_v47 = vld [vmem:[%s1738_s0 + $0xb0] sm:$0xff]  ;;  %v62_v56 = vld [vmem:[%s1738_s0 + $0xd8] sm:$0xff] }
  0x2a   :  { %1274 = vmatprep.subr.bf16.mxu1 %v1351_v57  ;;  %v1074_v52 = vcombine.high %v53_v46, %v57_v47  ;;  %v66_v57 = vld [vmem:[%s1738_s0 + $0xf8] sm:$0xff] }
  0x2b   :  { %780 = vmatmul.mubr.bf16.gmra.mrb[4].mxu0 %v1061_v53  ;;  %v1076_v53 = vcombine.high %v54_v48, %v58_v49 }
  0x2c   :  { %845 = vmatmul.mubr.bf16.gmra.mrb[4].mxu1 %v1063_v55  ;;  %1235 = vmatpush3.bf16.msra.mxu0 %v1352_v58  ;;  %v65_v55 = vld [vmem:[%s1738_s0 + $0xf0] sm:$0xff]  ;;  %v1073_v58 = vcombine.low %v53_v46, %v57_v47 }
  0x2d   :  { %1275 = vmatpush3.bf16.msra.mxu1 %v1353_v59  ;;  %1236 = vmatprep.subr.bf16.mxu0 %v1354_v60  ;;  %v1075_v59 = vcombine.low %v54_v48, %v58_v49  ;;  %v1082_v60 = vcombine.high %v61_v54, %v65_v55 }
  0x2e   :  { %1276 = vmatprep.subr.bf16.mxu1 %v1355_v61  ;;  %787 = vmatprep.mubr.bf16.mxu0 %v1070_v4  ;;  %v1084_v61 = vcombine.high %v62_v56, %v66_v57 }
  0x2f   :  { %852 = vmatprep.mubr.bf16.mxu1 %v1072_v5 }
  0x30   :  { %1237 = vmatpush3.bf16.msra.mxu0 %v1356_v62  ;;  %v1081_v62 = vcombine.low %v61_v54, %v65_v55 }
  0x31   :  { %1277 = vmatpush3.bf16.msra.mxu1 %v1357_v63  ;;  %1238 = vmatprep.subr.bf16.mxu0 %v1358_v8  ;;  %v1083_v63 = vcombine.low %v62_v56, %v66_v57 }
  0x32   :  { %1278 = vmatprep.subr.bf16.mxu1 %v1359_v9 }
  0x33   :  { %788 = vmatmul.mubr.bf16.gmra.mrb[8].mxu0 %v1069_v6 }
  0x34   :  { %853 = vmatmul.mubr.bf16.gmra.mrb[8].mxu1 %v1071_v7  ;;  %1239 = vmatpush3.bf16.msra.mxu0 %v1360_v10 }
  0x35   :  { %1279 = vmatpush3.bf16.msra.mxu1 %v1361_v11  ;;  %1240 = vmatprep.subr.bf16.mxu0 %v1362_v12 }
  0x36   :  { %1280 = vmatprep.subr.bf16.mxu1 %v1363_v13  ;;  %795 = vmatprep.mubr.bf16.mxu0 %v1078_v19 }
  0x37   :  { %860 = vmatprep.mubr.bf16.mxu1 %v1080_v22 }
  0x38   :  { %1241 = vmatpush3.bf16.msra.mxu0 %v1364_v14 }
  0x39   :  { %1281 = vmatpush3.bf16.msra.mxu1 %v1365_v15  ;;  %1242 = vmatprep.subr.bf16.mxu0 %v1366_v24 }
  0x3a   :  { %1282 = vmatprep.subr.bf16.mxu1 %v1367_v25 }
  0x3b   :  { %796 = vmatmul.mubr.bf16.gmra.mrb[12].mxu0 %v1077_v21 }
  0x3c   :  { %861 = vmatmul.mubr.bf16.gmra.mrb[12].mxu1 %v1079_v23  ;;  %1243 = vmatpush3.bf16.msra.mxu0 %v1368_v26 }
  0x3d   :  { %1283 = vmatpush3.bf16.msra.mxu1 %v1369_v27  ;;  %1244 = vmatprep.subr.bf16.mxu0 %v1370_v28 }
  0x3e   :  { %1284 = vmatprep.subr.bf16.mxu1 %v1371_v29  ;;  %901 = vmatprep.mubr.bf16.mxu0 %v1058_v35 }
  0x3f   :  { %966 = vmatprep.mubr.bf16.mxu1 %v1060_v40 }
  0x40   :  { %1245 = vmatpush3.bf16.msra.mxu0 %v1372_v30 }
  0x41   :  { %1285 = vmatpush3.bf16.msra.mxu1 %v1373_v31 }
  0x43   :  { %902 = vmatmul.mubr.bf16.vlgmr.msra.gmra.mrb[16].mxu0 %v1057_v34 }
  0x44   :  { %967 = vmatmul.mubr.bf16.vlgmr.msra.gmra.mrb[16].mxu1 %v1059_v39  ;;  %909 = vmatprep.mubr.bf16.mxu0 %v1066_v44 }
  0x45   :  { %974 = vmatprep.mubr.bf16.mxu1 %v1068_v45 }
  0x4b   :  { %910 = vmatmul.mubr.bf16.gmra.mrb[20].mxu0 %v1065_v50 }
  0x4c   :  { %975 = vmatmul.mubr.bf16.gmra.mrb[20].mxu1 %v1067_v51  ;;  %917 = vmatprep.mubr.bf16.mxu0 %v1074_v52 }
  0x4d   :  { %982 = vmatprep.mubr.bf16.mxu1 %v1076_v53 }
  0x53   :  { %918 = vmatmul.mubr.bf16.gmra.mrb[24].mxu0 %v1073_v58 }
  0x54   :  { %983 = vmatmul.mubr.bf16.gmra.mrb[24].mxu1 %v1075_v59  ;;  %925 = vmatprep.mubr.bf16.mxu0 %v1082_v60 }
  0x55   :  { %990 = vmatprep.mubr.bf16.mxu1 %v1084_v61 }
  0x5b   :  { %926 = vmatmul.mubr.bf16.gmra.mrb[28].mxu0 %v1081_v62 }
  0x5c   :  { %991 = vmatmul.mubr.bf16.gmra.mrb[28].mxu1 %v1083_v63 }
  0xf6   :  { %v1166_v0 = vpop.f32.mrb[0].mxu0 }
  0xf7   :  { %v1206_v1 = vpop.f32.mrb[0].mxu1  ;;  %v1167_v2 = vpop.f32.mrb[1].mxu0 }
  0xf8   :  { %v1168_v3 = vadd.f32 %v1167_v2, %v1166_v0  ;;  %v1207_v4 = vpop.f32.mrb[1].mxu1  ;;  %v1169_v5 = vpop.f32.mrb[2].mxu0 }
  0xf9   :  { %v1208_v6 = vadd.f32 %v1207_v4, %v1206_v1  ;;  %v1209_v7 = vpop.f32.mrb[2].mxu1  ;;  %v1170_v8 = vpop.f32.mrb[3].mxu0  ;;  %v1697_v4 = vld [vmem:[%s1739_s2] ss:$0 sm:$0xff] }
  0xfa   :  { %v1171_v9 = vadd.f32 %v1170_v8, %v1169_v5  ;;  %v1210_v10 = vpop.f32.mrb[3].mxu1 }
  0xfb   :  { %v839_v11 = vadd.f32 %v1208_v6, %v1168_v3  ;;  %v1211_v12 = vadd.f32 %v1210_v10, %v1209_v7 }
  0xfd   :  { %v842_v13 = vadd.f32 %v1211_v12, %v1171_v9 }
  0xfe   :  { %v1172_v14 = vpop.f32.mrb[4].mxu0 }
  0xff   :  { %v1212_v15 = vpop.f32.mrb[4].mxu1  ;;  %v1173_v16 = vpop.f32.mrb[5].mxu0 }
 0x100   :  { %v1174_v17 = vadd.f32 %v1173_v16, %v1172_v14  ;;  %v1213_v18 = vpop.f32.mrb[5].mxu1  ;;  %v1175_v19 = vpop.f32.mrb[6].mxu0 }
 0x101   :  { %v1214_v20 = vadd.f32 %v1213_v18, %v1212_v15  ;;  %v1215_v21 = vpop.f32.mrb[6].mxu1  ;;  %v1176_v22 = vpop.f32.mrb[7].mxu0 }
 0x102   :  { %v1177_v23 = vadd.f32 %v1176_v22, %v1175_v19  ;;  %v1216_v24 = vpop.f32.mrb[7].mxu1 }
 0x103   :  { %v1682_v25 = vadd.f32 %v1214_v20, %v1174_v17  ;;  %v1217_v26 = vadd.f32 %v1216_v24, %v1215_v21 }
 0x105   :  { %v1684_v27 = vadd.f32 %v1217_v26, %v1177_v23 }
 0x106   :  { %v1178_v28 = vpop.f32.mrb[8].mxu0 }
 0x107   :  { %v1218_v29 = vpop.f32.mrb[8].mxu1  ;;  %v1179_v30 = vpop.f32.mrb[9].mxu0 }
 0x108   :  { %v1219_v31 = vpop.f32.mrb[9].mxu1  ;;  %v1180_v32 = vadd.f32 %v1179_v30, %v1178_v28  ;;  %v1181_v34 = vpop.f32.mrb[10].mxu0 }
 0x109   :  { %v1220_v33 = vadd.f32 %v1219_v31, %v1218_v29  ;;  %v1221_v35 = vpop.f32.mrb[10].mxu1  ;;  %v1182_v36 = vpop.f32.mrb[11].mxu0 }
 0x10a   :  { %v1222_v37 = vpop.f32.mrb[11].mxu1  ;;  %v1183_v39 = vadd.f32 %v1182_v36, %v1181_v34 }
 0x10b   :  { %v1686_v38 = vadd.f32 %v1220_v33, %v1180_v32  ;;  %v1223_v40 = vadd.f32 %v1222_v37, %v1221_v35 }
 0x10d   :  { %v1688_v41 = vadd.f32 %v1223_v40, %v1183_v39 }
 0x10e   :  { %v1184_v42 = vpop.f32.mrb[12].mxu0 }
 0x10f   :  { %v1224_v43 = vpop.f32.mrb[12].mxu1  ;;  %v1185_v44 = vpop.f32.mrb[13].mxu0 }
 0x110   :  { %v1186_v45 = vadd.f32 %v1185_v44, %v1184_v42  ;;  %v1225_v46 = vpop.f32.mrb[13].mxu1  ;;  %v1187_v47 = vpop.f32.mrb[14].mxu0 }
 0x111   :  { %v1226_v48 = vadd.f32 %v1225_v46, %v1224_v43  ;;  %v1227_v49 = vpop.f32.mrb[14].mxu1  ;;  %v1188_v50 = vpop.f32.mrb[15].mxu0 }
 0x112   :  { %v1189_v51 = vadd.f32 %v1188_v50, %v1187_v47  ;;  %v1228_v52 = vpop.f32.mrb[15].mxu1 }
 0x113   :  { %v1690_v53 = vadd.f32 %v1226_v48, %v1186_v45  ;;  %v1229_v54 = vadd.f32 %v1228_v52, %v1227_v49 }
 0x115   :  { %v1692_v55 = vadd.f32 %v1229_v54, %v1189_v51 }
 0x116   :  { %v1246_v56 = vpop.f32.mrb[16].mxu0 }
 0x117   :  { %v1286_v57 = vpop.f32.mrb[16].mxu1  ;;  %v1247_v58 = vpop.f32.mrb[17].mxu0 }
 0x118   :  { %v1248_v59 = vadd.f32 %v1247_v58, %v1246_v56  ;;  %v1287_v60 = vpop.f32.mrb[17].mxu1  ;;  %v1249_v61 = vpop.f32.mrb[18].mxu0 }
 0x119   :  { %v1288_v62 = vadd.f32 %v1287_v60, %v1286_v57  ;;  %v1289_v63 = vpop.f32.mrb[18].mxu1  ;;  %v1250_v0 = vpop.f32.mrb[19].mxu0 }
 0x11a   :  { %v904_v1 = vadd.f32 %v1248_v59, %v839_v11  ;;  %v1251_v2 = vadd.f32 %v1250_v0, %v1249_v61  ;;  %v1290_v3 = vpop.f32.mrb[19].mxu1 }
 0x11b   :  { %v1291_v5 = vadd.f32 %v1290_v3, %v1289_v63 }
 0x11c   :  { %v969_v6 = vadd.f32 %v1288_v62, %v904_v1  ;;  %v907_v7 = vadd.f32 %v1251_v2, %v842_v13 }
 0x11e   :  { %v1033_v8 = vadd.f32 %v1697_v4, %v969_v6  ;;  %v972_v9 = vadd.f32 %v1291_v5, %v907_v7  ;;  %v1252_v10 = vpop.f32.mrb[20].mxu0 }
 0x11f   :  { %v1292_v12 = vpop.f32.mrb[20].mxu1  ;;  %v1253_v14 = vpop.f32.mrb[21].mxu0 }
 0x120   :  { %1041 = vst [vmem:[%s1740_s3] sm:$0xff] %v1033_v8  ;;  %v1034_v11 = vadd.f32 %v1697_v4, %v972_v9  ;;  %v1254_v15 = vadd.f32 %v1253_v14, %v1252_v10  ;;  %v1293_v16 = vpop.f32.mrb[21].mxu1  ;;  %v1255_v17 = vpop.f32.mrb[22].mxu0 }
 0x121   :  { %v1294_v18 = vadd.f32 %v1293_v16, %v1292_v12  ;;  %v1295_v19 = vpop.f32.mrb[22].mxu1  ;;  %v1256_v20 = vpop.f32.mrb[23].mxu0 }
 0x122   :  { %1042 = vst [vmem:[%s1740_s3 + $0x8] sm:$0xff] %v1034_v11  ;;  %v912_v13 = vadd.f32 %v1254_v15, %v1682_v25  ;;  %v1257_v21 = vadd.f32 %v1256_v20, %v1255_v17  ;;  %v1296_v22 = vpop.f32.mrb[23].mxu1 }
 0x123   :  { %v1297_v23 = vadd.f32 %v1296_v22, %v1295_v19 }
 0x124   :  { %v977_v24 = vadd.f32 %v1294_v18, %v912_v13  ;;  %v915_v26 = vadd.f32 %v1257_v21, %v1684_v27 }
 0x126   :  { %v1035_v28 = vadd.f32 %v1697_v4, %v977_v24  ;;  %v980_v29 = vadd.f32 %v1297_v23, %v915_v26  ;;  %v1258_v30 = vpop.f32.mrb[24].mxu0 }
 0x127   :  { %v1298_v31 = vpop.f32.mrb[24].mxu1  ;;  %v1259_v32 = vpop.f32.mrb[25].mxu0 }
 0x128   :  { %1043 = vst [vmem:[%s1740_s3 + $0x10] sm:$0xff] %v1035_v28  ;;  %v1036_v33 = vadd.f32 %v1697_v4, %v980_v29  ;;  %v1260_v34 = vadd.f32 %v1259_v32, %v1258_v30  ;;  %v1299_v25 = vpop.f32.mrb[25].mxu1  ;;  %v1261_v35 = vpop.f32.mrb[26].mxu0 }
 0x129   :  { %v1300_v36 = vadd.f32 %v1299_v25, %v1298_v31  ;;  %v1301_v37 = vpop.f32.mrb[26].mxu1  ;;  %v1262_v39 = vpop.f32.mrb[27].mxu0 }
 0x12a   :  { %1044 = vst [vmem:[%s1740_s3 + $0x18] sm:$0xff] %v1036_v33  ;;  %v920_v27 = vadd.f32 %v1260_v34, %v1686_v38  ;;  %v1263_v40 = vadd.f32 %v1262_v39, %v1261_v35  ;;  %v1302_v42 = vpop.f32.mrb[27].mxu1 }
 0x12b   :  { %v1303_v43 = vadd.f32 %v1302_v42, %v1301_v37 }
 0x12c   :  { %v985_v44 = vadd.f32 %v1300_v36, %v920_v27  ;;  %v923_v45 = vadd.f32 %v1263_v40, %v1688_v41 }
 0x12e   :  { %v1037_v46 = vadd.f32 %v1697_v4, %v985_v44  ;;  %v988_v47 = vadd.f32 %v1303_v43, %v923_v45  ;;  %v1264_v48 = vpop.f32.mrb[28].mxu0 }
 0x12f   :  { %v1304_v49 = vpop.f32.mrb[28].mxu1  ;;  %v1265_v50 = vpop.f32.mrb[29].mxu0 }
 0x130   :  { %1045 = vst [vmem:[%s1740_s3 + $0x20] sm:$0xff] %v1037_v46  ;;  %v1038_v51 = vadd.f32 %v1697_v4, %v988_v47  ;;  %v1266_v52 = vadd.f32 %v1265_v50, %v1264_v48  ;;  %v1305_v38 = vpop.f32.mrb[29].mxu1  ;;  %v1267_v54 = vpop.f32.mrb[30].mxu0 }
 0x131   :  { %v1306_v56 = vadd.f32 %v1305_v38, %v1304_v49  ;;  %v1307_v57 = vpop.f32.mrb[30].mxu1  ;;  %v1268_v58 = vpop.f32.mrb[31].mxu0 }
 0x132   :  { %1046 = vst [vmem:[%s1740_s3 + $0x28] sm:$0xff] %v1038_v51  ;;  %v928_v41 = vadd.f32 %v1266_v52, %v1690_v53  ;;  %v1269_v59 = vadd.f32 %v1268_v58, %v1267_v54  ;;  %v1308_v60 = vpop.f32.mrb[31].mxu1 }
 0x133   :  { %v1309_v61 = vadd.f32 %v1308_v60, %v1307_v57 }
 0x134   :  { %v993_v62 = vadd.f32 %v1306_v56, %v928_v41  ;;  %v931_v63 = vadd.f32 %v1269_v59, %v1692_v55 }
 0x136   :  { %v1039_v0 = vadd.f32 %v1697_v4, %v993_v62  ;;  %v996_v1 = vadd.f32 %v1309_v61, %v931_v63 }
 0x138   :  { %1047 = vst [vmem:[%s1740_s3 + $0x30] sm:$0xff] %v1039_v0  ;;  %v1040_v2 = vadd.f32 %v1697_v4, %v996_v1 }
 0x13a   :  { %1048 = vst [vmem:[%s1740_s3 + $0x38] sm:$0xff] %v1040_v2 }

</bundles_post_ra>
